<compile_context>
chip_gen: v7x
topology: tpu7x:2x2x1
jax: 0.10.0
libtpu: 0.0.40
codegen_flags: <defaults>
</compile_context>

<pallas_src>
import functools

import jax
import jax.numpy as jnp
from jax.experimental import pallas as pl
from jax.experimental.pallas import tpu as pltpu


def _pick_row_block(H, W, C):
    """Largest divisor of H whose (TH, W, C) f32 plane stays around <= 2 MiB."""
    row_bytes_f32 = W * C * 4
    target_rows = max(1, (2 * 1024 * 1024) // max(1, row_bytes_f32))
    th = 1
    for d in range(1, H + 1):
        if H % d == 0 and d <= target_rows:
            th = d
    return th


def _dwconv_kernel(x_ref, up_ref, dn_ref, w_ref, b_ref, o_ref, *, TH, W, C):
    """One (TH, W, C) output tile of the depthwise 3x3 conv."""
    r = pl.program_id(1)
    n_r = pl.num_programs(1)
    f32 = jnp.float32

    # Center rows of this tile plus the two halo rows (zeroed at the image border;
    # their index maps are clamped, so border content is garbage and must be masked).
    x_c = x_ref[...].astype(f32)                               # (TH, W, C)
    top_keep = (r > 0).astype(f32)                             # row above exists?
    bot_keep = (r < n_r - 1).astype(f32)                       # row below exists?
    row_up = up_ref[...].astype(f32) * top_keep                # (1, W, C): image row r*TH-1
    row_dn = dn_ref[...].astype(f32) * bot_keep                # (1, W, C): image row (r+1)*TH

    # H-shifted planes via outer-dim (aligned) slices; no padded scratch, no zero fill.
    if TH > 1:
        x_up = jnp.concatenate([row_up, x_c[:TH - 1]], axis=0)  # row h = image row base+h-1
        x_dn = jnp.concatenate([x_c[1:], row_dn], axis=0)       # row h = image row base+h+1
    else:
        x_up, x_dn = row_up, row_dn

    w = w_ref[...].astype(f32)                                  # (9, C), k = ky*3 + kx

    def tap(k):                                                 # (1, 1, C) broadcastable tap
        return w[k:k + 1, :].reshape(1, 1, C)

    # Per-kx partial planes: only aligned H shifts here (pure VPU work).
    q = []
    for kx in range(3):
        q.append(x_up * tap(0 * 3 + kx) + x_c * tap(1 * 3 + kx) + x_dn * tap(2 * 3 + kx))

    # +/-1 W shifts on the XLU via pltpu.roll; the wrapped edge column corresponds to
    # the out-of-image tap and is masked to zero.
    col = jax.lax.broadcasted_iota(jnp.int32, (1, W, 1), 1)
    left_keep = (col != 0).astype(f32)          # kx=0 tap invalid at w == 0
    right_keep = (col != W - 1).astype(f32)     # kx=2 tap invalid at w == W-1

    acc = q[1]
    acc = acc + pltpu.roll(q[0], shift=1, axis=1) * left_keep
    acc = acc + pltpu.roll(q[2], shift=W - 1, axis=1) * right_keep
    acc = acc + b_ref[...].reshape(1, 1, C).astype(f32)

    o_ref[...] = acc.astype(o_ref.dtype)


def dwconv(x, weight, bias, H, W, *, row_block=None):
    """Depthwise 3x3 conv (stride 1, pad 1, groups=C, bias) matching DWConv.forward.

    x:      (B, N, C) with N == H * W  (token-major, channels last)
    weight: (C, 3, 3)  (torch's (C, 1, 3, 3) squeezed)
    bias:   (C,)
    returns (B, N, C)
    """
    B, N, C = x.shape
    assert N == H * W, "token count must equal H*W"
    assert weight.shape == (C, 3, 3) and bias.shape == (C,)

    TH = _pick_row_block(H, W, C) if row_block is None else int(row_block)
    assert H % TH == 0, "row block must divide H"
    n_r = H // TH

    # (B, N, C) -> (B, H, W, C): contiguous reshape (no transpose, no extra HBM pass).
    x_nhwc = x.reshape(B, H, W, C)
    w9c = jnp.transpose(weight.reshape(C, 9), (1, 0))    # (9, C), k = ky*3 + kx
    b2d = bias.reshape(1, C)

    # Explicit scoped-VMEM budget: double-buffered pipeline IO + resident params
    # + headroom for the compiler's in-kernel f32 temporaries.
    itemsize = jnp.dtype(x.dtype).itemsize
    tile_io = TH * W * C * itemsize
    halo_io = 2 * W * C * itemsize
    plane_f32 = TH * W * C * 4
    vmem_est = 2 * (2 * tile_io + halo_io) + 12 * plane_f32 + 10 * C * 4 + (4 << 20)
    vmem_limit = int(min(max(vmem_est, 8 << 20), 48 << 20))

    kernel = functools.partial(_dwconv_kernel, TH=TH, W=W, C=C)

    out_nhwc = pl.pallas_call(
        kernel,
        out_shape=jax.ShapeDtypeStruct((B, H, W, C), x.dtype),
        grid_spec=pltpu.PrefetchScalarGridSpec(
            num_scalar_prefetch=0,
            grid=(B, n_r),
            in_specs=[
                # main tile: output rows [r*TH, (r+1)*TH)
                pl.BlockSpec((None, TH, W, C), lambda b, r: (b, r, 0, 0)),
                # halo row above (block size 1 on H => block index == element row);
                # clamped at the top edge, masked to zero in-kernel.
                pl.BlockSpec((None, 1, W, C),
                             lambda b, r: (b, jnp.maximum(r * TH - 1, 0), 0, 0)),
                # halo row below; clamped at the bottom edge, masked in-kernel.
                pl.BlockSpec((None, 1, W, C),
                             lambda b, r: (b, jnp.minimum((r + 1) * TH, H - 1), 0, 0)),
                # VMEM-resident weights and bias (constant index maps).
                pl.BlockSpec((9, C), lambda b, r: (0, 0)),
                pl.BlockSpec((1, C), lambda b, r: (0, 0)),
            ],
            out_specs=pl.BlockSpec((None, TH, W, C), lambda b, r: (b, r, 0, 0)),
        ),
        compiler_params=pltpu.CompilerParams(
            dimension_semantics=("parallel", "parallel"),
            vmem_limit_bytes=vmem_limit,
        ),
    )(x_nhwc, x_nhwc, x_nhwc, w9c, b2d)

    return out_nhwc.reshape(B, N, C)


def _reference(x, weight, bias, H, W):
    """Plain-JAX replica of the PyTorch NCHW path."""
    B, N, C = x.shape
    x_nchw = jnp.transpose(x, (0, 2, 1)).reshape(B, C, H, W)
    y = jax.lax.conv_general_dilated(
        x_nchw, weight.reshape(C, 1, 3, 3),
        window_strides=(1, 1), padding=((1, 1), (1, 1)),
        feature_group_count=C,
        dimension_numbers=("NCHW", "OIHW", "NCHW"),
    ) + bias.reshape(1, C, 1, 1)
    return jnp.transpose(y.reshape(B, C, N), (0, 2, 1))


if __name__ == "__main__":
    # Small shapes consistent with DWConv.forward(x, H, W): x is (B, N=H*W, C).
    B, C, H, W = 2, 64, 16, 16
    N = H * W

    key = jax.random.PRNGKey(0)
    kx_, kw_, kb_ = jax.random.split(key, 3)

    x = jax.random.normal(kx_, (B, N, C), dtype=jnp.float32)
    # nn.Conv2d depthwise default init: U(-1/sqrt(fan_in)), fan_in = 1*3*3 = 9
    bound = 1.0 / 3.0
    weight = jax.random.uniform(kw_, (C, 3, 3), minval=-bound, maxval=bound,
                                dtype=jnp.float32)
    bias = jax.random.uniform(kb_, (C,), minval=-bound, maxval=bound,
                              dtype=jnp.float32)

    ref = _reference(x, weight, bias, H, W)

    # Default path (whole image fits one row block here).
    out = dwconv(x, weight, bias, H, W)
    jax.block_until_ready(out)
    assert out.shape == (B, N, C)
    assert jnp.allclose(out, ref, atol=1e-4, rtol=1e-4), \
        float(jnp.max(jnp.abs(out - ref)))

    # Forced multi-tile run: exercises the clamped/masked row-halo path.
    out_tiled = dwconv(x, weight, bias, H, W, row_block=8)
    jax.block_until_ready(out_tiled)
    assert jnp.allclose(out_tiled, ref, atol=1e-4, rtol=1e-4), \
        float(jnp.max(jnp.abs(out_tiled - ref)))

    print("KERNEL_OK")
</pallas_src>

<mosaic_0001>
module attributes {stable_mosaic.version = 11 : i64} {
  func.func @_dwconv_kernel(%arg0: i32, %arg1: i32, %arg2: memref<1x16x16x64xf32, #tpu.memory_space<vmem>>, %arg3: memref<1x1x16x64xf32, #tpu.memory_space<vmem>>, %arg4: memref<1x1x16x64xf32, #tpu.memory_space<vmem>>, %arg5: memref<9x64xf32, #tpu.memory_space<vmem>>, %arg6: memref<1x64xf32, #tpu.memory_space<vmem>>, %arg7: memref<1x16x16x64xf32, #tpu.memory_space<vmem>>) attributes {dimension_semantics = [#tpu.dimension_semantics<parallel>, #tpu.dimension_semantics<parallel>], iteration_bounds = array<i64: 2, 1>, scalar_prefetch = 0 : i64, scratch_operands = 0 : i64, tpu.core_type = #tpu.core_type<tc>, window_params = [{transform_indices = @transform_0, window_bounds = array<i64: 1, 16, 16, 64>}, {transform_indices = @transform_1, window_bounds = array<i64: 1, 1, 16, 64>}, {transform_indices = @transform_2, window_bounds = array<i64: 1, 1, 16, 64>}, {pipeline_mode = #tpu.pipeline_mode<synchronous>, transform_indices = @transform_3, window_bounds = array<i64: 9, 64>}, {pipeline_mode = #tpu.pipeline_mode<synchronous>, transform_indices = @transform_4, window_bounds = array<i64: 1, 64>}, {transform_indices = @transform_5, window_bounds = array<i64: 1, 16, 16, 64>}]} {
    %c0 = arith.constant 0 : index
    %c0_0 = arith.constant 0 : index
    %c0_1 = arith.constant 0 : index
    %c0_2 = arith.constant 0 : index
    %0 = vector.load %arg2[%c0, %c0_0, %c0_1, %c0_2] : memref<1x16x16x64xf32, #tpu.memory_space<vmem>>, vector<1x16x16x64xf32>
    %1 = vector.shape_cast %0 : vector<1x16x16x64xf32> to vector<16x16x64xf32>
    %c0_i32 = arith.constant 0 : i32
    %2 = arith.cmpi sgt, %arg1, %c0_i32 : i32
    %3 = arith.extui %2 : i1 to i32
    %4 = arith.sitofp %3 : i32 to f32
    %c0_i32_3 = arith.constant 0 : i32
    %5 = arith.cmpi slt, %arg1, %c0_i32_3 : i32
    %6 = arith.extui %5 : i1 to i32
    %7 = arith.sitofp %6 : i32 to f32
    %c0_4 = arith.constant 0 : index
    %c0_5 = arith.constant 0 : index
    %c0_6 = arith.constant 0 : index
    %c0_7 = arith.constant 0 : index
    %8 = vector.load %arg3[%c0_4, %c0_5, %c0_6, %c0_7] : memref<1x1x16x64xf32, #tpu.memory_space<vmem>>, vector<1x1x16x64xf32>
    %9 = vector.shape_cast %8 : vector<1x1x16x64xf32> to vector<1x16x64xf32>
    %10 = vector.broadcast %4 : f32 to vector<1x16x64xf32>
    %11 = arith.mulf %9, %10 : vector<1x16x64xf32>
    %c0_8 = arith.constant 0 : index
    %c0_9 = arith.constant 0 : index
    %c0_10 = arith.constant 0 : index
    %c0_11 = arith.constant 0 : index
    %12 = vector.load %arg4[%c0_8, %c0_9, %c0_10, %c0_11] : memref<1x1x16x64xf32, #tpu.memory_space<vmem>>, vector<1x1x16x64xf32>
    %13 = vector.shape_cast %12 : vector<1x1x16x64xf32> to vector<1x16x64xf32>
    %14 = vector.broadcast %7 : f32 to vector<1x16x64xf32>
    %15 = arith.mulf %13, %14 : vector<1x16x64xf32>
    %16 = vector.extract_strided_slice %1 {offsets = [0, 0, 0], sizes = [15, 16, 64], strides = [1, 1, 1]} : vector<16x16x64xf32> to vector<15x16x64xf32>
    %17 = tpu.concatenate %11, %16 in 0 : vector<1x16x64xf32>, vector<15x16x64xf32> -> vector<16x16x64xf32>
    %18 = vector.extract_strided_slice %1 {offsets = [1, 0, 0], sizes = [15, 16, 64], strides = [1, 1, 1]} : vector<16x16x64xf32> to vector<15x16x64xf32>
    %19 = tpu.concatenate %18, %15 in 0 : vector<15x16x64xf32>, vector<1x16x64xf32> -> vector<16x16x64xf32>
    %c0_12 = arith.constant 0 : index
    %c0_13 = arith.constant 0 : index
    %20 = vector.load %arg5[%c0_12, %c0_13] : memref<9x64xf32, #tpu.memory_space<vmem>>, vector<9x64xf32>
    %21 = vector.extract_strided_slice %20 {offsets = [0, 0], sizes = [1, 64], strides = [1, 1]} : vector<9x64xf32> to vector<1x64xf32>
    %22 = vector.shape_cast %21 : vector<1x64xf32> to vector<1x1x64xf32>
    %23 = vector.broadcast %22 : vector<1x1x64xf32> to vector<16x16x64xf32>
    %24 = arith.mulf %17, %23 : vector<16x16x64xf32>
    %25 = vector.extract_strided_slice %20 {offsets = [3, 0], sizes = [1, 64], strides = [1, 1]} : vector<9x64xf32> to vector<1x64xf32>
    %26 = vector.shape_cast %25 : vector<1x64xf32> to vector<1x1x64xf32>
    %27 = vector.broadcast %26 : vector<1x1x64xf32> to vector<16x16x64xf32>
    %28 = arith.mulf %1, %27 : vector<16x16x64xf32>
    %29 = arith.addf %24, %28 : vector<16x16x64xf32>
    %30 = vector.extract_strided_slice %20 {offsets = [6, 0], sizes = [1, 64], strides = [1, 1]} : vector<9x64xf32> to vector<1x64xf32>
    %31 = vector.shape_cast %30 : vector<1x64xf32> to vector<1x1x64xf32>
    %32 = vector.broadcast %31 : vector<1x1x64xf32> to vector<16x16x64xf32>
    %33 = arith.mulf %19, %32 : vector<16x16x64xf32>
    %34 = arith.addf %29, %33 : vector<16x16x64xf32>
    %35 = vector.extract_strided_slice %20 {offsets = [1, 0], sizes = [1, 64], strides = [1, 1]} : vector<9x64xf32> to vector<1x64xf32>
    %36 = vector.shape_cast %35 : vector<1x64xf32> to vector<1x1x64xf32>
    %37 = vector.broadcast %36 : vector<1x1x64xf32> to vector<16x16x64xf32>
    %38 = arith.mulf %17, %37 : vector<16x16x64xf32>
    %39 = vector.extract_strided_slice %20 {offsets = [4, 0], sizes = [1, 64], strides = [1, 1]} : vector<9x64xf32> to vector<1x64xf32>
    %40 = vector.shape_cast %39 : vector<1x64xf32> to vector<1x1x64xf32>
    %41 = vector.broadcast %40 : vector<1x1x64xf32> to vector<16x16x64xf32>
    %42 = arith.mulf %1, %41 : vector<16x16x64xf32>
    %43 = arith.addf %38, %42 : vector<16x16x64xf32>
    %44 = vector.extract_strided_slice %20 {offsets = [7, 0], sizes = [1, 64], strides = [1, 1]} : vector<9x64xf32> to vector<1x64xf32>
    %45 = vector.shape_cast %44 : vector<1x64xf32> to vector<1x1x64xf32>
    %46 = vector.broadcast %45 : vector<1x1x64xf32> to vector<16x16x64xf32>
    %47 = arith.mulf %19, %46 : vector<16x16x64xf32>
    %48 = arith.addf %43, %47 : vector<16x16x64xf32>
    %49 = vector.extract_strided_slice %20 {offsets = [2, 0], sizes = [1, 64], strides = [1, 1]} : vector<9x64xf32> to vector<1x64xf32>
    %50 = vector.shape_cast %49 : vector<1x64xf32> to vector<1x1x64xf32>
    %51 = vector.broadcast %50 : vector<1x1x64xf32> to vector<16x16x64xf32>
    %52 = arith.mulf %17, %51 : vector<16x16x64xf32>
    %53 = vector.extract_strided_slice %20 {offsets = [5, 0], sizes = [1, 64], strides = [1, 1]} : vector<9x64xf32> to vector<1x64xf32>
    %54 = vector.shape_cast %53 : vector<1x64xf32> to vector<1x1x64xf32>
    %55 = vector.broadcast %54 : vector<1x1x64xf32> to vector<16x16x64xf32>
    %56 = arith.mulf %1, %55 : vector<16x16x64xf32>
    %57 = arith.addf %52, %56 : vector<16x16x64xf32>
    %58 = vector.extract_strided_slice %20 {offsets = [8, 0], sizes = [1, 64], strides = [1, 1]} : vector<9x64xf32> to vector<1x64xf32>
    %59 = vector.shape_cast %58 : vector<1x64xf32> to vector<1x1x64xf32>
    %60 = vector.broadcast %59 : vector<1x1x64xf32> to vector<16x16x64xf32>
    %61 = arith.mulf %19, %60 : vector<16x16x64xf32>
    %62 = arith.addf %57, %61 : vector<16x16x64xf32>
    %63 = tpu.iota {dimensions = array<i32: 1>} : vector<1x16x1xi32>
    %c0_i32_14 = arith.constant 0 : i32
    %64 = vector.broadcast %c0_i32_14 : i32 to vector<1x16x1xi32>
    %65 = arith.cmpi ne, %63, %64 : vector<1x16x1xi32>
    %66 = arith.extui %65 : vector<1x16x1xi1> to vector<1x16x1xi32>
    %67 = arith.sitofp %66 : vector<1x16x1xi32> to vector<1x16x1xf32>
    %c15_i32 = arith.constant 15 : i32
    %68 = vector.broadcast %c15_i32 : i32 to vector<1x16x1xi32>
    %69 = arith.cmpi ne, %63, %68 : vector<1x16x1xi32>
    %70 = arith.extui %69 : vector<1x16x1xi1> to vector<1x16x1xi32>
    %71 = arith.sitofp %70 : vector<1x16x1xi32> to vector<1x16x1xf32>
    %c1_i32 = arith.constant 1 : i32
    %72 = tpu.dynamic_rotate %34 by %c1_i32 dim 1 : vector<16x16x64xf32>, i32 -> vector<16x16x64xf32>
    %73 = vector.broadcast %67 : vector<1x16x1xf32> to vector<16x16x64xf32>
    %74 = arith.mulf %72, %73 : vector<16x16x64xf32>
    %75 = arith.addf %48, %74 : vector<16x16x64xf32>
    %c15_i32_15 = arith.constant 15 : i32
    %76 = tpu.dynamic_rotate %62 by %c15_i32_15 dim 1 : vector<16x16x64xf32>, i32 -> vector<16x16x64xf32>
    %77 = vector.broadcast %71 : vector<1x16x1xf32> to vector<16x16x64xf32>
    %78 = arith.mulf %76, %77 : vector<16x16x64xf32>
    %79 = arith.addf %75, %78 : vector<16x16x64xf32>
    %c0_16 = arith.constant 0 : index
    %c0_17 = arith.constant 0 : index
    %80 = vector.load %arg6[%c0_16, %c0_17] : memref<1x64xf32, #tpu.memory_space<vmem>>, vector<1x64xf32>
    %81 = vector.shape_cast %80 : vector<1x64xf32> to vector<1x1x64xf32>
    %82 = vector.broadcast %81 : vector<1x1x64xf32> to vector<16x16x64xf32>
    %83 = arith.addf %79, %82 : vector<16x16x64xf32>
    %c0_18 = arith.constant 0 : index
    %c0_19 = arith.constant 0 : index
    %c0_20 = arith.constant 0 : index
    %c0_21 = arith.constant 0 : index
    %84 = vector.load %arg7[%c0_18, %c0_19, %c0_20, %c0_21] : memref<1x16x16x64xf32, #tpu.memory_space<vmem>>, vector<1x16x16x64xf32>
    %85 = vector.shape_cast %84 : vector<1x16x16x64xf32> to vector<16x16x64xf32>
    %86 = vector.shape_cast %83 : vector<16x16x64xf32> to vector<1x16x16x64xf32>
    tpu.vector_store %arg7[%c0_18, %c0_19, %c0_20, %c0_21], %86 {strides = array<i32>} : memref<1x16x16x64xf32, #tpu.memory_space<vmem>>, vector<1x16x16x64xf32>,
    return
  }
  func.func @transform_0(%arg0: i32, %arg1: i32) -> (i32, i32, i32, i32) {
    %c0_i32 = arith.constant 0 : i32
    %c0_i32_0 = arith.constant 0 : i32
    %c0_i32_1 = arith.constant 0 : i32
    return %arg0, %arg1, %c0_i32, %c0_i32_0 : i32, i32, i32, i32
  }
  func.func @transform_1(%arg0: i32, %arg1: i32) -> (i32, i32, i32, i32) {
    %c16_i32 = arith.constant 16 : i32
    %0 = arith.muli %arg1, %c16_i32 : i32
    %c1_i32 = arith.constant 1 : i32
    %1 = arith.subi %0, %c1_i32 : i32
    %c0_i32 = arith.constant 0 : i32
    %2 = arith.maxsi %1, %c0_i32 : i32
    %c0_i32_0 = arith.constant 0 : i32
    %c0_i32_1 = arith.constant 0 : i32
    %c0_i32_2 = arith.constant 0 : i32
    return %arg0, %2, %c0_i32_0, %c0_i32_1 : i32, i32, i32, i32
  }
  func.func @transform_2(%arg0: i32, %arg1: i32) -> (i32, i32, i32, i32) {
    %c1_i32 = arith.constant 1 : i32
    %0 = arith.addi %arg1, %c1_i32 : i32
    %c16_i32 = arith.constant 16 : i32
    %1 = arith.muli %0, %c16_i32 : i32
    %c15_i32 = arith.constant 15 : i32
    %2 = arith.minsi %1, %c15_i32 : i32
    %c0_i32 = arith.constant 0 : i32
    %c0_i32_0 = arith.constant 0 : i32
    %c0_i32_1 = arith.constant 0 : i32
    return %arg0, %2, %c0_i32, %c0_i32_0 : i32, i32, i32, i32
  }
  func.func @transform_3(%arg0: i32, %arg1: i32) -> (i32, i32) {
    %c0_i32 = arith.constant 0 : i32
    %c0_i32_0 = arith.constant 0 : i32
    %c0_i32_1 = arith.constant 0 : i32
    return %c0_i32, %c0_i32_0 : i32, i32
  }
  func.func @transform_4(%arg0: i32, %arg1: i32) -> (i32, i32) {
    %c0_i32 = arith.constant 0 : i32
    %c0_i32_0 = arith.constant 0 : i32
    %c0_i32_1 = arith.constant 0 : i32
    return %c0_i32, %c0_i32_0 : i32, i32
  }
  func.func @transform_5(%arg0: i32, %arg1: i32) -> (i32, i32, i32, i32) {
    %c0_i32 = arith.constant 0 : i32
    %c0_i32_0 = arith.constant 0 : i32
    %c0_i32_1 = arith.constant 0 : i32
    return %arg0, %arg1, %c0_i32, %c0_i32_0 : i32, i32, i32, i32
  }
}

</mosaic_0001>

<bundles_post_ra>
// kernel: tpu_custom_call.1
= control target key start
LH: loop header
LB: loop body
LE: loop exit
PB: predicated region body
PF: predicated region fallthrough
CT: control target
= control target key end

     0   :  { %s3136_s0 = inlined_call_operand.hbm [shape: f32[2,16,16,64], index: 0, kind: input, shape index: {}]   ;;  %s3137_s1 = inlined_call_operand.hbm [shape: f32[2,16,16,64], index: 1, kind: input, shape index: {}]   ;;  %s3138_s2 = inlined_call_operand.hbm [shape: f32[2,16,16,64], index: 2, kind: input, shape index: {}]   ;;  %s3139_s3 = inlined_call_operand.hbm [shape: f32[9,64], index: 3, kind: input, shape index: {}]   ;;  %s3140_s4 = inlined_call_operand.vmem [shape: f32[1,64], index: 4, kind: input, shape index: {}]   ;;  %s3141_s5 = inlined_call_operand.hbm [shape: f32[2,16,16,64], index: 5, kind: output, shape index: {}]  }
   0x1   :  { %3161 = sst [smem:[#allocation21_spill]] %s3136_s0 }
   0x2   :  { %3162 = sst [smem:[#allocation22_spill]] %s3137_s1 }
   0x3   :  { %10 = vsyncpa [#allocation3], 0 }
   0x4   :  { %12 = vsyncpa [#allocation3 + $0x1], 0 }
   0x5   :  { %13 = vsyncpa [#allocation6], 0 }
   0x6   :  { %15 = vsyncpa [#allocation6 + $0x1], 0 }
   0x7   :  { %16 = vsyncpa [#allocation9], 0 }
   0x8   :  { %17 = vsyncpa [#allocation4], 0 }
   0x9   :  { %19 = vsyncpa [#allocation4 + $0x1], 0  ;;  %s1845_s18 = smov 0   ;;  %s1847_s19 = smov 0  }
   0xa   :  { %s1849_s20 = smov 0   ;;  %s1851_s21 = smov 0  }
   0xb   :  { %s1853_s22 = smov 0   ;;  %s1855_s23 = smov 0  }
   0xc LB: > { %3163 = sst [smem:[#allocation15_spill]] %s1791_s20  ;;  %s37_s24 = sadd.s32 1, %s1799_s22  ;;  %s1803_s23 = sphi %s1855_s23, %s25_s23   ;;  %s1799_s22 = sphi %s1853_s22, %s3196_s22   ;;  %s1795_s21 = sphi %s1851_s21, %s3195_s21   ;;  %s1791_s20 = sphi %s1849_s20, %s3194_s20   ;;  %s1787_s19 = sphi %s1847_s19, %s3198_s19   ;;  %s1783_s18 = sphi %s1845_s18, %s3197_s18  }
   0xd   : > { %3164 = sst [smem:[#allocation16_spill]] %s1799_s22  ;;  %s46_s25 = sadd.s32 1, %s1791_s20 }
   0xe   : > { %3165 = sst [smem:[#allocation17_spill]] %s1803_s23  ;;  %p39_p0 = scmp.ge.s32.totalorder %s37_s24, 2 }
   0xf   : > { %p3142_p1 = scmp.ne.s32.totalorder %s1791_s20, %s1787_s19  ;;  %p54_p2 = scmp.eq.s32.totalorder %s1803_s23, 0 }
  0x10   : > { %s3200_s24 = smov (%p39_p0, %s37_s24), 0  ;;  %p1536_p6 = scmp.lt.s32.totalorder %s1803_s23, 2 }
  0x11   : > { %3166 = sst [smem:[#allocation18_spill]] %s3200_s24  ;;  %p55_p3 = por %p54_p2, %p3142_p1 }
  0x12   : > { %s41_s26 = ssub.s32 %s1799_s22, %s3200_s24  ;;  %s1890_s27 = sand.u32 1, %s1791_s20  }
  0x13   : > { %p44_p5 = scmp.eq.s32.totalorder %s41_s26, 0  ;;  %s1893_s28 = sshll.u32 %s1799_s22, 12 }
  0x14   : > { %p1898_p7 = pnand %p1536_p6, %p55_p3  ;;  %s265_s6 = sand.u32 1, %s1803_s23  }
  0x15   : > { %s1896_s29 = scalar_select %p44_p5, %s1791_s20, %s46_s25  }
  0x16   : > { %s3168_s30 = scalar_select %p1898_p7, 1, 0 }
  0x17   : > { %3167 = sst [smem:[#allocation19_spill]] %s1896_s29  ;;  %s1478_s7 = sshll.u32 %s1890_s27, 4 }
  0x18   : > { %s3169_s1 = sld [smem:[#allocation22_spill]]  ;;  %s269_s11 = scalar_lea.vmem [#allocation5], %s1478_s7 }
  0x19   : > { %s282_s12 = sshll.u32 %s269_s11, 4  ;;  %s1914_s13 = scalar_lea.sflag [#allocation6], %s265_s6  ;;  %s1912_s12 = int_to_ptr.vmem [resolvable:$true] %s282_s12 }
  0x1a   : > { %p1920_p9 = pneg %p1898_p7 }
  0x1c   : > { %s3170_s15 = scalar_select %p1920_p9, 1, 0 }
  0x1e   : > { %s1908_s10 = scalar_lea.hbm %s3169_s1, %s1893_s28  ;;  %s1600_s25 = scalar_lea.hbm %s3169_s1, 8192 }
  0x1f   : > { %s1595_s14 = scalar_lea.hbm %s1908_s10, 256  ;;  %p1601_p12 = scmp.lt.u32.totalorder %s1908_s10, %s3169_s1 }
  0x20   : > { %p1596_p8 = scmp.ne.s32.totalorder %s1908_s10, %s1595_s14  ;;  %p1602_p13 = scmp.lt.u32.totalorder %s1600_s25, %s1595_s14 }
  0x21   : > { %p1604_p2 = scmp.lt.u32.totalorder %s1595_s14, %s1908_s10 }
  0x22   : > { %p1598_p10 = pnand %p1920_p9, %p1596_p8  ;;  %p1603_p0 = por %p1602_p13, %p1601_p12 }
  0x24   : > { %p1599_p11 = pneg %p1598_p10  ;;  %p1605_p3 = por %p1604_p2, %p1603_p0 }
  0x26   : > { %p1606_p5 = pnand %p1605_p3, %p1599_p11 }
  0x28   : > { %1609 = shalt.err (!%p1606_p5)
}
  0x29   : > { %s1610_s6 = scalar_lea.vmem %s1912_s12, 256  ;;  %s1805_s9 = smov [#allocation5]  }
  0x2a   : > { %p1611_p6 = scmp.ne.s32.totalorder %s1912_s12, %s1610_s6  ;;  %s1615_s11 = sshll.u32 %s1805_s9, 4  ;;  %s1616_s11 = int_to_ptr.vmem [resolvable:$false] %s1615_s11 }
  0x2b   : > { %s1617_s16 = scalar_lea.vmem %s1616_s11, 512  ;;  %p1618_p4 = scmp.lt.s32.totalorder %s1912_s12, %s1616_s11 }
  0x2c   : > { %p1613_p8 = pnand %p1611_p6, %p1920_p9  ;;  %p1619_p1 = scmp.lt.s32.totalorder %s1617_s16, %s1610_s6 }
  0x2e   : > { %p1614_p10 = pneg %p1613_p8  ;;  %p1620_p12 = por %p1619_p1, %p1618_p4 }
  0x30   : > { %p1621_p13 = pnand %p1620_p12, %p1614_p10 }
  0x32   : > { %1624 = shalt.err (!%p1621_p13)
}
  0x33   : > { %s3143_s14 = smov 128   ;;  %s3145_s17 = smov 8  }
  0x34   : > { %1527 = dma.hbm_to_vmem [thread:$0]  (!%p1898_p7), %s1908_s10, 256, %s1912_s12, %s1914_s13, %s3143_s14, %s3143_s14, %s3145_s17  }
  0x35   : > { %s296_s25 = scalar_lea.vmem [#allocation7], %s1478_s7  ;;  %s1952_s8 = sadd.s32 4294967295, %s1803_s23  }
  0x36   : > { %s309_s26 = sshll.u32 %s296_s25, 4  ;;  %s1471_s6 = sadd.s32 4294967294, %s1803_s23   ;;  %s1949_s26 = int_to_ptr.vmem [resolvable:$true] %s309_s26 }
  0x37   : > { %p59_p1 = scmp.ne.s32.totalorder %s1787_s19, %s1783_s18  ;;  %p3152_p4 = scmp.eq.s32.totalorder %s1952_s8, 0 }
  0x38   : > { %p199_p11 = scmp.eq.s32.totalorder %s1952_s8, 1  ;;  %p205_p0 = scmp.eq.s32.totalorder %s1471_s6, 1 }
  0x39   : > { %p1961_p2 = por %p3152_p4, %p59_p1  ;;  %p1472_p3 = scmp.ge.s32.totalorder %s1803_s23, 1 }
  0x3a   : > { %p3172_p5 = scmp.ne.s32.totalorder %s1791_s20, %s1787_s19  ;;  %p1973_p8 = por %p205_p0, %p59_p1 }
  0x3b   : > { %s3171_s10 = scalar_select %p1961_p2, 1, 0 }
  0x3c   : > { %p1969_p6 = por %p199_p11, %p3172_p5  ;;  %p212_p10 = scmp.lt.s32.totalorder %s1803_s23, 3 }
  0x3d   : > { %s3174_s12 = scalar_select %p1973_p8, 1, 0 }
  0x3e   : > { %s3173_s7 = scalar_select %p1969_p6, 1, 0 }
  0x3f   : > { %3175 = sst [smem:[#allocation20_spill]] %s3174_s12  ;;  %p1978_p12 = pnand %p1472_p3, %p212_p10 }
  0x40   : > { %s1808_s11 = smov [#allocation8]   ;;  %s1475_s25 = sshll.u32 %s1890_s27, 8 }
  0x41   : > { %s3176_s9 = scalar_select %p1978_p12, 1, 0 }
  0x42   : > { %s224_s16 = sshll.u32 %s1808_s11, 4  ;;  %p1517_p13 = pneg %p1978_p12  ;;  %s1982_s16 = int_to_ptr.vmem [resolvable:$true] %s224_s16 }
  0x43   : > { %s3177_s0 = sld [smem:[#allocation21_spill]]  ;;  %s245_s1 = scalar_lea.vmem [#allocation2], %s1475_s25 }
  0x44   : > { %s255_s24 = sshll.u32 %s245_s1, 4  ;;  %p1995_p1 = pnand %p1517_p13, %p3152_p4  ;;  %s1999_s24 = int_to_ptr.vmem [resolvable:$true] %s255_s24 }
  0x45   : > { %s242_s11 = scalar_lea.sflag [#allocation3], %s1890_s27 }
  0x46   : > { %s3178_s22 = scalar_select %p1995_p1, 1, 0 }
  0x49   : > { %s1991_s17 = scalar_lea.hbm %s3177_s0, %s1893_s28  ;;  %s1630_s20 = scalar_lea.hbm %s3177_s0, 8192 }
  0x4a   : > { %s1625_s29 = scalar_lea.hbm %s1991_s17, 4096  ;;  %p1631_p5 = scmp.lt.u32.totalorder %s1991_s17, %s3177_s0 }
  0x4b   : > { %p1626_p11 = scmp.ne.s32.totalorder %s1991_s17, %s1625_s29  ;;  %p1632_p10 = scmp.lt.u32.totalorder %s1630_s20, %s1625_s29 }
  0x4c   : > { %p1634_p4 = scmp.lt.u32.totalorder %s1625_s29, %s1991_s17 }
  0x4d   : > { %p1628_p0 = pnand %p1626_p11, %p1920_p9  ;;  %p1633_p13 = por %p1632_p10, %p1631_p5 }
  0x4f   : > { %p1629_p3 = pneg %p1628_p0  ;;  %p1635_p8 = por %p1634_p4, %p1633_p13 }
  0x51   : > { %p1636_p6 = pnand %p1635_p8, %p1629_p3 }
  0x53   : > { %1639 = shalt.err (!%p1636_p6)
}
  0x54   : > { %s1640_s1 = scalar_lea.vmem %s1999_s24, 4096  ;;  %s1809_s14 = smov [#allocation2]  }
  0x55   : > { %p1641_p11 = scmp.ne.s32.totalorder %s1999_s24, %s1640_s1  ;;  %s1645_s6 = sshll.u32 %s1809_s14, 4  ;;  %s1646_s6 = int_to_ptr.vmem [resolvable:$false] %s1645_s6 }
  0x56   : > { %s1647_s23 = scalar_lea.vmem %s1646_s6, 8192  ;;  %p1648_p12 = scmp.lt.s32.totalorder %s1999_s24, %s1646_s6 }
  0x57   : > { %p1643_p0 = pnand %p1641_p11, %p1920_p9  ;;  %p1649_p1 = scmp.lt.s32.totalorder %s1647_s23, %s1640_s1 }
  0x59   : > { %p1644_p2 = pneg %p1643_p0  ;;  %p1650_p5 = por %p1649_p1, %p1648_p12 }
  0x5b   : > { %p1651_p10 = pnand %p1650_p5, %p1644_p2 }
  0x5d   : > { %1654 = shalt.err (!%p1651_p10)
}
  0x5e   : > { %s3179_s20 = smov 8   ;;  %s3180_s29 = smov 128  }
  0x5f   : > { %1524 = dma.hbm_to_vmem [thread:$0]  (!%p1898_p7), %s1991_s17, 4096, %s1999_s24, %s242_s11, %s3180_s29, %s3180_s29, %s3179_s20  }
  0x60   : > { %s1502_s25 = sadd.s32 3840, %s1893_s28  ;;  %s1655_s1 = scalar_lea.hbm %s3139_s3, 256 }
  0x61   : > { %p1656_p4 = scmp.ne.s32.totalorder %s3139_s3, %s1655_s1  ;;  %p3181_p2 = scmp.ne.s32.totalorder %s3178_s22, 0 }
  0x62   : > { %p1662_p1 = scmp.lt.u32.totalorder %s1655_s1, %s3139_s3 }
  0x63   : > { %p1657_p6 = pneg %p3181_p2 }
  0x65   : > { %p1658_p8 = pnand %p1657_p6, %p1656_p4 }
  0x67   : > { %p1659_p12 = pneg %p1658_p8 }
  0x69   : > { %p1664_p3 = pnand %p1662_p1, %p1659_p12 }
  0x6b   : > { %1667 = shalt.err (!%p1664_p3)
}
  0x6c   : > { %s1668_s24 = scalar_lea.vmem %s1982_s16, 256  ;;  %p1676_p5 = scmp.lt.s32.totalorder %s1982_s16, %s1982_s16 }
  0x6d   : > { %p1669_p13 = scmp.ne.s32.totalorder %s1982_s16, %s1668_s24  ;;  %p1677_p10 = scmp.lt.s32.totalorder %s1668_s24, %s1668_s24 }
  0x6f   : > { %p1671_p11 = pnand %p1669_p13, %p1657_p6  ;;  %p1678_p7 = por %p1677_p10, %p1676_p5 }
  0x71   : > { %p1672_p0 = pneg %p1671_p11 }
  0x73   : > { %p1679_p9 = pnand %p1678_p7, %p1672_p0 }
  0x75   : > { %1682 = shalt.err (!%p1679_p9)
}
  0x76   : > { %1520 = dma.hbm_to_vmem [thread:$0]  (!%p3181_p2), %s3139_s3, 256, %s1982_s16, [#allocation9], %s3180_s29, %s3180_s29, %s3179_s20  }
  0x77   : > { %s2056_s11 = scalar_lea.hbm %s3138_s2, %s1502_s25  ;;  %p3182_p9 = scmp.ne.s32.totalorder %s3170_s15, 0 }
  0x78   : > { %s1683_s14 = scalar_lea.hbm %s2056_s11, 256  ;;  %s1688_s6 = scalar_lea.hbm %s3138_s2, 8192 }
  0x79   : > { %p1684_p7 = scmp.ne.s32.totalorder %s2056_s11, %s1683_s14  ;;  %p1689_p2 = scmp.lt.u32.totalorder %s2056_s11, %s3138_s2 }
  0x7a   : > { %p1690_p8 = scmp.lt.u32.totalorder %s1688_s6, %s1683_s14  ;;  %p1692_p1 = scmp.lt.u32.totalorder %s1683_s14, %s2056_s11 }
  0x7b   : > { %p1686_p4 = pnand %p1684_p7, %p3182_p9 }
  0x7c   : > { %p1691_p12 = por %p1690_p8, %p1689_p2 }
  0x7d   : > { %p1687_p6 = pneg %p1686_p4 }
  0x7e   : > { %p1693_p3 = por %p1692_p1, %p1691_p12 }
  0x80   : > { %p1694_p13 = pnand %p1693_p3, %p1687_p6 }
  0x82   : > { %1697 = shalt.err (!%p1694_p13)
}
  0x83   : > { %s1698_s25 = scalar_lea.vmem %s1949_s26, 256  ;;  %s1810_s27 = smov [#allocation7]  }
  0x84   : > { %p1699_p11 = scmp.ne.s32.totalorder %s1949_s26, %s1698_s25  ;;  %s1703_s24 = sshll.u32 %s1810_s27, 4  ;;  %s1704_s24 = int_to_ptr.vmem [resolvable:$false] %s1703_s24 }
  0x85   : > { %s1705_s0 = scalar_lea.vmem %s1704_s24, 512  ;;  %p1706_p10 = scmp.lt.s32.totalorder %s1949_s26, %s1704_s24 }
  0x86   : > { %p1701_p0 = pnand %p1699_p11, %p3182_p9  ;;  %p1707_p7 = scmp.lt.s32.totalorder %s1705_s0, %s1698_s25 }
  0x88   : > { %p1702_p5 = pneg %p1701_p0  ;;  %p1708_p4 = por %p1707_p7, %p1706_p10 }
  0x8a   : > { %p1709_p2 = pnand %p1708_p4, %p1702_p5 }
  0x8c   : > { %1712 = shalt.err (!%p1709_p2)
}
  0x8d   : > { %p3183_p6 = scmp.ne.s32.totalorder %s3168_s30, 0  ;;  %p3184_p9 = scmp.ne.s32.totalorder %s3176_s9, 0 }
  0x8e   : > { %s2086_s15 = sand.u32 (!%p3184_p9), 1, %s1787_s19   ;;  %p3185_p8 = scmp.ne.s32.totalorder (!%p3184_p9), %s3171_s10, 0 }
  0x8f   : > { %1530 = dma.hbm_to_vmem [thread:$0]  (!%p3183_p6), %s2056_s11, 256, %s1949_s26, %s1914_s13, %s3180_s29, %s3180_s29, %s3179_s20  }
  0x90   : > { %321 = sbr.rel (%p3184_p9) target bundleno = 374 (0x176), region = 40  ;;  %s1485_s28 = sshll.u32 (!%p3184_p9), %s2086_s15, 8 }
  0x91   : > { %s324_s17 = scalar_lea.sflag (!%p3184_p9), [#allocation3], %s2086_s15  ;;  %s2092_s30 = scalar_lea.vmem (!%p3184_p9), [#allocation2], %s1485_s28 }
  0x97   : > { %1766 = dma.done.wait (%p3185_p8), %s324_s17, 4096  }
  0x98   : > { %1768 = vsyncadd (%p3185_p8), %s324_s17, 4294963200  ;;  %s332_s13 = sand.u32 1, %s1952_s8   ;;  %s1486_s26 = sshll.u32 %s2086_s15, 4 }
  0x99   : > { %s333_s9 = scalar_lea.sflag [#allocation6], %s332_s13  ;;  %s336_s20 = scalar_lea.vmem [#allocation5], %s1486_s26 }
  0x9a   : > { %1770 = dma.done.wait (%p3185_p8), %s333_s9, 512  }
  0x9b   : > { %1772 = vsyncadd (%p3185_p8), %s333_s9, 4294966784  ;;  %s2104_s29 = scalar_lea.vmem [#allocation7], %s1486_s26  ;;  %p3186_p12 = scmp.eq.s32.totalorder %s1952_s8, 0 }
  0x9d   : > { %1774 = dma.done.wait (%p3186_p12), [#allocation9], 256   ;;  %p3187_p1 = pmov %p3186_p12 }
  0x9e   : > { %v446_v0 = vlaneseq  ;;  %v2123_v11 = vld [vmem:[%s2092_s30] sm:$0xff]  ;;  %v435_v13 = vld [vmem:[%s336_s20 + $0x8] sm:$0xff]  ;;  %v1811_v18 = vmov 0.0   ;;  %v2150_v29 = vld [vmem:[%s2092_s30 + $0x10] sm:$0xff]  ;;  %vm1274_vm4 = vcmask 523264   ;;  %s2243_s12 = scalar_lea.vmem [#allocation10], %s1485_s28 }
  0x9f   : > { %1776 = vsyncadd (%p3187_p1), [#allocation9], 4294967040  ;;  %v434_v12 = vld [vmem:[%s336_s20] sm:$0xff]  ;;  %v2126_v14 = vld [vmem:[%s2092_s30 + $0x8] sm:$0xff]  ;;  %v438_v16 = vmul.f32 0.0, %v435_v13  ;;  %s1503_s22 = sshll.u32 %s1795_s21, 12 }
  0xa0   : > { %v2110_v1 = vshrl.u32 %v446_v0, 7  ;;  %v437_v15 = vmul.f32 0.0, %v434_v12  ;;  %v444_v17 = vld [vmem:[#allocation8] sm:$0xff]  ;;  %v2153_v30 = vld [vmem:[%s2092_s30 + $0x18] sm:$0xff]  ;;  %v2162_v35 = vld [vmem:[#allocation8 + $0x8] ss:$0 sm:$0xff]  ;;  %s3080_s16 = scalar_lea.hbm %s3141_s5, %s1503_s22 }
  0xa1   : > { %v898_v50 = vmul.f32 %v2162_v35, %v2150_v29  ;;  %v899_v51 = vmul.f32 %v2162_v35, %v2153_v30  ;;  %s1324_s1 = sshll.u32 %s2243_s12, 4  ;;  %s1308_s21 = scalar_lea.sflag [#allocation4], %s2086_s15  ;;  %s3082_s1 = int_to_ptr.vmem [resolvable:$true] %s1324_s1 }
  0xa2   : > { %v448_v2 = vsub.s32 0, %v2110_v1  ;;  %v484_v3 = vsub.s32 3, %v2110_v1  ;;  %v552_v4 = vsub.s32 6, %v2110_v1  ;;  %v620_v5 = vsub.s32 1, %v2110_v1  ;;  %s1713_s25 = scalar_lea.vmem %s3082_s1, 4096  ;;  %p3188_p13 = scmp.ne.s32.totalorder %s3173_s7, 0 }
  0xa3   : > { %vm965_vm0 = vcmp.ne.s32.totalorder %v2110_v1, 0  ;;  %v964_v6 = vadd.s32 8, %v2110_v1  ;;  %v656_v7 = vsub.s32 4, %v2110_v1  ;;  %v724_v8 = vsub.s32 7, %v2110_v1  ;;  %p1714_p3 = scmp.ne.s32.totalorder %s3082_s1, %s1713_s25  ;;  %s1812_s27 = smov [#allocation10]  }
  0xa4   : > { %v792_v9 = vsub.s32 2, %v2110_v1  ;;  %v828_v10 = vsub.s32 5, %v2110_v1  ;;  %v2128_v19 = vsel %vm965_vm0, 1.0, %v1811_v18  ;;  %vm1009_vm2 = vcmp.lt.s32.totalorder %v2110_v1, 1  ;;  %s1717_s24 = sshll.u32 %s1812_s27, 4  ;;  %s1718_s24 = int_to_ptr.vmem [resolvable:$false] %s1717_s24 }
  0xa5   : > { %vm972_vm1 = vcmp.ne.s32.totalorder %v964_v6, 15  ;;  %v2133_v21 = vrot.slane %v444_v17, %v448_v2  ;;  %v2135_v22 = vrot.slane %v444_v17, %v484_v3  ;;  %v2137_v23 = vrot.slane %v444_v17, %v552_v4  ;;  %p1715_p11 = pnand %p1714_p3, %p3188_p13  ;;  %s1719_s0 = scalar_lea.vmem %s1718_s24, 8192 }
  0xa6   : > { %v2131_v20 = vsel %vm972_vm1, 1.0, %v1811_v18  ;;  %v2139_v24 = vrot.slane %v444_v17, %v620_v5  ;;  %v2141_v25 = vrot.slane %v444_v17, %v656_v7  ;;  %v2143_v26 = vrot.slane %v444_v17, %v724_v8  ;;  %v2200_v8 = vld [vmem:[%s2092_s30 + $0x20] sm:$0xff]  ;;  %p1720_p5 = scmp.lt.s32.totalorder %s3082_s1, %s1718_s24  ;;  %p1721_p10 = scmp.lt.s32.totalorder %s1719_s0, %s1713_s25 }
  0xa7   : > { %v2145_v27 = vrot.slane %v444_v17, %v792_v9  ;;  %v2147_v28 = vrot.slane %v444_v17, %v828_v10  ;;  %v450_v31 = vmul.f32 %v2133_v21, %v437_v15  ;;  %v451_v32 = vmul.f32 %v2133_v21, %v438_v16  ;;  %v2203_v9 = vld [vmem:[%s2092_s30 + $0x28] sm:$0xff]  ;;  %p1716_p0 = pneg %p1715_p11 }
  0xa8   : > { %v486_v33 = vmul.f32 %v2135_v22, %v2123_v11  ;;  %v487_v34 = vmul.f32 %v2135_v22, %v2126_v14  ;;  %vm1138_vm3 = vcmp.lt.s32.totalorder %v2110_v1, 7  ;;  %v554_v36 = vmul.f32 %v2137_v23, %v2150_v29  ;;  %p1722_p7 = por %p1721_p10, %p1720_p5 }
  0xa9   : > { %v555_v37 = vmul.f32 %v2137_v23, %v2153_v30  ;;  %v622_v38 = vmul.f32 %v2139_v24, %v437_v15  ;;  %v658_v39 = vmul.f32 %v2141_v25, %v2123_v11  ;;  %v726_v42 = vmul.f32 %v2143_v26, %v2150_v29 }
  0xaa   : > { %v518_v40 = vadd.f32 %v486_v33, %v450_v31  ;;  %v519_v41 = vadd.f32 %v487_v34, %v451_v32  ;;  %v794_v43 = vmul.f32 %v2145_v27, %v437_v15  ;;  %v795_v45 = vmul.f32 %v2145_v27, %v438_v16  ;;  %v2218_v33 = vld [vmem:[%s3140_s4] ss:$0 sm:$0xff]  ;;  %p1723_p4 = pnand %p1722_p7, %p1716_p0 }
  0xab   : > { %v690_v44 = vadd.f32 %v658_v39, %v622_v38  ;;  %v830_v46 = vmul.f32 %v2147_v28, %v2123_v11  ;;  %v831_v47 = vmul.f32 %v2147_v28, %v2126_v14  ;;  %v623_v55 = vmul.f32 %v2139_v24, %v438_v16 }
  0xac   : > { %v586_v48 = vadd.f32 %v554_v36, %v518_v40  ;;  %v587_v49 = vadd.f32 %v555_v37, %v519_v41  ;;  %v659_v58 = vmul.f32 %v2141_v25, %v2126_v14  ;;  %v727_v59 = vmul.f32 %v2143_v26, %v2153_v30 }
  0xad   : > { %v758_v52 = vadd.f32 %v726_v42, %v690_v44  ;;  %v862_v53 = vadd.f32 %v830_v46, %v794_v43  ;;  %v863_v54 = vadd.f32 %v831_v47, %v795_v45  ;;  %v452_v62 = vmul.f32 %v2133_v21, %v2123_v11 }
  0xae   : > { %v977_v56 = vrot.slane %v586_v48, 7  ;;  %v993_v57 = vrot.slane %v587_v49, 7  ;;  %v453_v63 = vmul.f32 %v2133_v21, %v2126_v14  ;;  %v691_v2 = vadd.f32 %v659_v58, %v623_v55 }
  0xaf   : > { %v930_v60 = vadd.f32 %v898_v50, %v862_v53  ;;  %v931_v61 = vadd.f32 %v899_v51, %v863_v54  ;;  %v488_v4 = vmul.f32 %v2135_v22, %v2150_v29  ;;  %v489_v10 = vmul.f32 %v2135_v22, %v2153_v30 }
  0xb0   : > { %v1026_v0 = vsel %vm1009_vm2, %v993_v57, %v977_v56  ;;  %v1010_v3 = vsel %vm1009_vm2, %v977_v56, %v993_v57  ;;  %v759_v12 = vadd.f32 %v727_v59, %v691_v2  ;;  %v556_v15 = vmul.f32 %v2137_v23, %v2200_v8 }
  0xb1   : > { %v1042_v5 = vmul.f32 %v2128_v19, %v1026_v0  ;;  %v1106_v6 = vrot.slane %v930_v60, 1  ;;  %v1122_v7 = vrot.slane %v931_v61, 1  ;;  %v520_v13 = vadd.f32 %v488_v4, %v452_v62 }
  0xb2   : > { %v557_v16 = vmul.f32 %v2137_v23, %v2203_v9  ;;  %v521_v32 = vadd.f32 %v489_v10, %v453_v63  ;;  %v1075_v34 = vadd.f32 %v1010_v3, %v759_v12  ;;  %v624_v38 = vmul.f32 %v2139_v24, %v2123_v11 }
  0xb3   : > { %v1074_v17 = vadd.f32 %v1042_v5, %v758_v52  ;;  %v1139_v18 = vsel %vm1138_vm3, %v1106_v6, %v1122_v7  ;;  %v1155_v31 = vsel %vm1138_vm3, %v1122_v7, %v1106_v6  ;;  %v588_v37 = vadd.f32 %v556_v15, %v520_v13  ;;  %v2265_v5 = vld [vmem:[%s2092_s30 + $0x30] sm:$0xff]  ;;  %v2268_v6 = vld [vmem:[%s2092_s30 + $0x38] sm:$0xff] }
  0xb4   : > { %v1172_v36 = vmul.f32 %v2131_v20, %v1155_v31  ;;  %v589_v40 = vadd.f32 %v557_v16, %v521_v32  ;;  %v660_v41 = vmul.f32 %v2141_v25, %v2150_v29  ;;  %v728_v42 = vmul.f32 %v2143_v26, %v2200_v8 }
  0xb5   : > { %v1203_v39 = vadd.f32 %v1139_v18, %v1074_v17  ;;  %v796_v44 = vmul.f32 %v2145_v27, %v2123_v11  ;;  %v797_v45 = vmul.f32 %v2145_v27, %v2126_v14  ;;  %v832_v46 = vmul.f32 %v2147_v28, %v2150_v29 }
  0xb6   : > { %v1204_v43 = vadd.f32 %v1172_v36, %v1075_v34  ;;  %v692_v48 = vadd.f32 %v660_v41, %v624_v38  ;;  %v833_v49 = vmul.f32 %v2147_v28, %v2153_v30  ;;  %v900_v50 = vmul.f32 %v2162_v35, %v2200_v8 }
  0xb7   : > { %v1242_v47 = vadd.f32 %v2218_v33, %v1203_v39  ;;  %v864_v52 = vadd.f32 %v832_v46, %v796_v44  ;;  %v901_v11 = vmul.f32 %v2162_v35, %v2203_v9  ;;  %v978_v53 = vrot.slane %v588_v37, 7 }
  0xb8   : > { %v1243_v51 = vadd.f32 %v2218_v33, %v1204_v43  ;;  %v760_v54 = vadd.f32 %v728_v42, %v692_v48  ;;  %v865_v55 = vadd.f32 %v833_v49, %v797_v45  ;;  %v994_v56 = vrot.slane %v589_v40, 7 }
  0xb9   : > { %1275 = vst.msk [vmem:[%s2243_s12] sm:$0xff] %vm1274_vm4, %v1242_v47  ;;  %v625_v57 = vmul.f32 %v2139_v24, %v2126_v14  ;;  %v932_v58 = vadd.f32 %v900_v50, %v864_v52  ;;  %v661_v59 = vmul.f32 %v2141_v25, %v2153_v30  ;;  %v729_v60 = vmul.f32 %v2143_v26, %v2203_v9 }
  0xba   : > { %1276 = vst.msk [vmem:[%s2243_s12 + $0x8] sm:$0xff] %vm1274_vm4, %v1243_v51  ;;  %v454_v61 = vmul.f32 %v2133_v21, %v2150_v29  ;;  %v933_v62 = vadd.f32 %v901_v11, %v865_v55  ;;  %v1027_v63 = vsel %vm1009_vm2, %v994_v56, %v978_v53  ;;  %v1011_v0 = vsel %vm1009_vm2, %v978_v53, %v994_v56 }
  0xbb   : > { %v455_v14 = vmul.f32 %v2133_v21, %v2153_v30  ;;  %v1044_v2 = vmul.f32 %v2128_v19, %v1027_v63  ;;  %v1107_v3 = vrot.slane %v932_v58, 1  ;;  %v693_v4 = vadd.f32 %v661_v59, %v625_v57 }
  0xbc   : > { %v490_v7 = vmul.f32 %v2135_v22, %v2200_v8  ;;  %v1123_v10 = vrot.slane %v933_v62, 1  ;;  %v491_v12 = vmul.f32 %v2135_v22, %v2203_v9  ;;  %v558_v13 = vmul.f32 %v2137_v23, %v2265_v5 }
  0xbd   : > { %v559_v15 = vmul.f32 %v2137_v23, %v2268_v6  ;;  %v1076_v16 = vadd.f32 %v1044_v2, %v760_v54  ;;  %v761_v17 = vadd.f32 %v729_v60, %v693_v4  ;;  %v626_v31 = vmul.f32 %v2139_v24, %v2150_v29  ;;  %v2321_v2 = vld [vmem:[%s2092_s30 + $0x40] sm:$0xff] }
  0xbe   : > { %v522_v18 = vadd.f32 %v490_v7, %v454_v61  ;;  %v1140_v32 = vsel %vm1138_vm3, %v1107_v3, %v1123_v10  ;;  %v1156_v34 = vsel %vm1138_vm3, %v1123_v10, %v1107_v3  ;;  %v523_v36 = vadd.f32 %v491_v12, %v455_v14  ;;  %v2326_v7 = vld [vmem:[%s2092_s30 + $0x48] sm:$0xff] }
  0xbf   : > { %v662_v37 = vmul.f32 %v2141_v25, %v2200_v8  ;;  %v1205_v38 = vadd.f32 %v1140_v32, %v1076_v16  ;;  %v1077_v39 = vadd.f32 %v1011_v0, %v761_v17  ;;  %v1174_v40 = vmul.f32 %v2131_v20, %v1156_v34 }
  0xc0   : > { %v590_v41 = vadd.f32 %v558_v13, %v522_v18  ;;  %v591_v42 = vadd.f32 %v559_v15, %v523_v36  ;;  %v730_v44 = vmul.f32 %v2143_v26, %v2265_v5  ;;  %v798_v45 = vmul.f32 %v2145_v27, %v2150_v29 }
  0xc1   : > { %v694_v43 = vadd.f32 %v662_v37, %v626_v31  ;;  %v1244_v46 = vadd.f32 %v2218_v33, %v1205_v38  ;;  %v1206_v47 = vadd.f32 %v1174_v40, %v1077_v39  ;;  %v799_v48 = vmul.f32 %v2145_v27, %v2153_v30 }
  0xc2   : > { %v834_v49 = vmul.f32 %v2147_v28, %v2200_v8  ;;  %v835_v51 = vmul.f32 %v2147_v28, %v2203_v9  ;;  %v902_v52 = vmul.f32 %v2162_v35, %v2265_v5  ;;  %v903_v29 = vmul.f32 %v2162_v35, %v2268_v6 }
  0xc3   : > { %v762_v50 = vadd.f32 %v730_v44, %v694_v43  ;;  %1277 = vst.msk [vmem:[%s2243_s12 + $0x10] sm:$0xff] %vm1274_vm4, %v1244_v46  ;;  %v1245_v11 = vadd.f32 %v2218_v33, %v1206_v47  ;;  %v979_v54 = vrot.slane %v590_v41, 7  ;;  %v995_v55 = vrot.slane %v591_v42, 7 }
  0xc4   : > { %v866_v53 = vadd.f32 %v834_v49, %v798_v45  ;;  %v867_v56 = vadd.f32 %v835_v51, %v799_v48  ;;  %v627_v57 = vmul.f32 %v2139_v24, %v2153_v30  ;;  %v663_v58 = vmul.f32 %v2141_v25, %v2203_v9 }
  0xc5   : > { %v731_v59 = vmul.f32 %v2143_v26, %v2268_v6  ;;  %1278 = vst.msk [vmem:[%s2243_s12 + $0x18] sm:$0xff] %vm1274_vm4, %v1245_v11  ;;  %v1028_v61 = vsel %vm1009_vm2, %v995_v55, %v979_v54  ;;  %v1012_v62 = vsel %vm1009_vm2, %v979_v54, %v995_v55  ;;  %v456_v63 = vmul.f32 %v2133_v21, %v2200_v8 }
  0xc6   : > { %v934_v60 = vadd.f32 %v902_v52, %v866_v53  ;;  %v935_v0 = vadd.f32 %v903_v29, %v867_v56  ;;  %v1046_v30 = vmul.f32 %v2128_v19, %v1028_v61  ;;  %v695_v14 = vadd.f32 %v663_v58, %v627_v57 }
  0xc7   : > { %v457_v3 = vmul.f32 %v2133_v21, %v2203_v9  ;;  %v492_v10 = vmul.f32 %v2135_v22, %v2265_v5  ;;  %v493_v12 = vmul.f32 %v2135_v22, %v2268_v6  ;;  %v560_v13 = vmul.f32 %v2137_v23, %v2321_v2 }
  0xc8   : > { %v1108_v4 = vrot.slane %v934_v60, 1  ;;  %v1078_v15 = vadd.f32 %v1046_v30, %v762_v50  ;;  %v1124_v16 = vrot.slane %v935_v0, 1  ;;  %v763_v17 = vadd.f32 %v731_v59, %v695_v14 }
  0xc9   : > { %v561_v18 = vmul.f32 %v2137_v23, %v2326_v7  ;;  %v524_v31 = vadd.f32 %v492_v10, %v456_v63  ;;  %v525_v32 = vadd.f32 %v493_v12, %v457_v3  ;;  %v628_v34 = vmul.f32 %v2139_v24, %v2200_v8  ;;  %v2384_v10 = vld [vmem:[%s2092_s30 + $0x58] sm:$0xff] }
  0xca   : > { %v664_v36 = vmul.f32 %v2141_v25, %v2265_v5  ;;  %v1141_v37 = vsel %vm1138_vm3, %v1108_v4, %v1124_v16  ;;  %v1079_v38 = vadd.f32 %v1012_v62, %v763_v17  ;;  %v1157_v39 = vsel %vm1138_vm3, %v1124_v16, %v1108_v4  ;;  %v2381_v4 = vld [vmem:[%s2092_s30 + $0x50] sm:$0xff] }
  0xcb   : > { %v732_v40 = vmul.f32 %v2143_v26, %v2321_v2  ;;  %v1207_v41 = vadd.f32 %v1141_v37, %v1078_v15  ;;  %v1176_v42 = vmul.f32 %v2131_v20, %v1157_v39  ;;  %v592_v43 = vadd.f32 %v560_v13, %v524_v31 }
  0xcc   : > { %v593_v44 = vadd.f32 %v561_v18, %v525_v32  ;;  %v696_v45 = vadd.f32 %v664_v36, %v628_v34  ;;  %v800_v46 = vmul.f32 %v2145_v27, %v2200_v8  ;;  %v801_v47 = vmul.f32 %v2145_v27, %v2203_v9 }
  0xcd   : > { %v836_v48 = vmul.f32 %v2147_v28, %v2265_v5  ;;  %v1246_v49 = vadd.f32 %v2218_v33, %v1207_v41  ;;  %v1208_v50 = vadd.f32 %v1176_v42, %v1079_v38  ;;  %v837_v51 = vmul.f32 %v2147_v28, %v2268_v6 }
  0xce   : > { %v904_v52 = vmul.f32 %v2162_v35, %v2321_v2  ;;  %v764_v29 = vadd.f32 %v732_v40, %v696_v45  ;;  %v905_v8 = vmul.f32 %v2162_v35, %v2326_v7  ;;  %v980_v53 = vrot.slane %v592_v43, 7 }
  0xcf   : > { %v868_v11 = vadd.f32 %v836_v48, %v800_v46  ;;  %1279 = vst.msk [vmem:[%s2243_s12 + $0x20] sm:$0xff] %vm1274_vm4, %v1246_v49  ;;  %v1247_v54 = vadd.f32 %v2218_v33, %v1208_v50  ;;  %v869_v55 = vadd.f32 %v837_v51, %v801_v47  ;;  %v996_v56 = vrot.slane %v593_v44, 7 }
  0xd0   : > { %v629_v57 = vmul.f32 %v2139_v24, %v2203_v9  ;;  %v665_v59 = vmul.f32 %v2141_v25, %v2268_v6  ;;  %v733_v60 = vmul.f32 %v2143_v26, %v2326_v7  ;;  %v458_v61 = vmul.f32 %v2133_v21, %v2265_v5 }
  0xd1   : > { %v936_v58 = vadd.f32 %v904_v52, %v868_v11  ;;  %1280 = vst.msk [vmem:[%s2243_s12 + $0x28] sm:$0xff] %vm1274_vm4, %v1247_v54  ;;  %v937_v62 = vadd.f32 %v905_v8, %v869_v55  ;;  %v1029_v63 = vsel %vm1009_vm2, %v996_v56, %v980_v53  ;;  %v1013_v0 = vsel %vm1009_vm2, %v980_v53, %v996_v56 }
  0xd2   : > { %v459_v9 = vmul.f32 %v2133_v21, %v2268_v6  ;;  %v1048_v30 = vmul.f32 %v2128_v19, %v1029_v63  ;;  %v697_v3 = vadd.f32 %v665_v59, %v629_v57  ;;  %v494_v12 = vmul.f32 %v2135_v22, %v2321_v2 }
  0xd3   : > { %v1109_v14 = vrot.slane %v936_v58, 1  ;;  %v1125_v13 = vrot.slane %v937_v62, 1  ;;  %v495_v15 = vmul.f32 %v2135_v22, %v2326_v7  ;;  %v562_v16 = vmul.f32 %v2137_v23, %v2381_v4 }
  0xd4   : > { %v563_v17 = vmul.f32 %v2137_v23, %v2384_v10  ;;  %v1080_v18 = vadd.f32 %v1048_v30, %v764_v29  ;;  %v765_v31 = vadd.f32 %v733_v60, %v697_v3  ;;  %v526_v32 = vadd.f32 %v494_v12, %v458_v61  ;;  %v2437_v30 = vld [vmem:[%s2092_s30 + $0x60] sm:$0xff]  ;;  %v2442_v12 = vld [vmem:[%s2092_s30 + $0x68] sm:$0xff] }
  0xd5   : > { %v630_v34 = vmul.f32 %v2139_v24, %v2265_v5  ;;  %v1142_v36 = vsel %vm1138_vm3, %v1109_v14, %v1125_v13  ;;  %v1158_v37 = vsel %vm1138_vm3, %v1125_v13, %v1109_v14  ;;  %v527_v38 = vadd.f32 %v495_v15, %v459_v9 }
  0xd6   : > { %v666_v39 = vmul.f32 %v2141_v25, %v2321_v2  ;;  %v1209_v40 = vadd.f32 %v1142_v36, %v1080_v18  ;;  %v1081_v41 = vadd.f32 %v1013_v0, %v765_v31  ;;  %v1178_v42 = vmul.f32 %v2131_v20, %v1158_v37 }
  0xd7   : > { %v594_v43 = vadd.f32 %v562_v16, %v526_v32  ;;  %v595_v44 = vadd.f32 %v563_v17, %v527_v38  ;;  %v734_v46 = vmul.f32 %v2143_v26, %v2381_v4  ;;  %v802_v47 = vmul.f32 %v2145_v27, %v2265_v5 }
  0xd8   : > { %v698_v45 = vadd.f32 %v666_v39, %v630_v34  ;;  %v1248_v48 = vadd.f32 %v2218_v33, %v1209_v40  ;;  %v1210_v49 = vadd.f32 %v1178_v42, %v1081_v41  ;;  %v803_v50 = vmul.f32 %v2145_v27, %v2268_v6 }
  0xd9   : > { %v838_v51 = vmul.f32 %v2147_v28, %v2321_v2  ;;  %v839_v29 = vmul.f32 %v2147_v28, %v2326_v7  ;;  %v906_v11 = vmul.f32 %v2162_v35, %v2381_v4  ;;  %v907_v5 = vmul.f32 %v2162_v35, %v2384_v10 }
  0xda   : > { %v766_v52 = vadd.f32 %v734_v46, %v698_v45  ;;  %1281 = vst.msk [vmem:[%s2243_s12 + $0x30] sm:$0xff] %vm1274_vm4, %v1248_v48  ;;  %v1249_v8 = vadd.f32 %v2218_v33, %v1210_v49  ;;  %v981_v54 = vrot.slane %v594_v43, 7  ;;  %v997_v55 = vrot.slane %v595_v44, 7 }
  0xdb   : > { %v870_v53 = vadd.f32 %v838_v51, %v802_v47  ;;  %v871_v56 = vadd.f32 %v839_v29, %v803_v50  ;;  %v631_v57 = vmul.f32 %v2139_v24, %v2268_v6  ;;  %v667_v58 = vmul.f32 %v2141_v25, %v2326_v7 }
  0xdc   : > { %v735_v59 = vmul.f32 %v2143_v26, %v2384_v10  ;;  %1282 = vst.msk [vmem:[%s2243_s12 + $0x38] sm:$0xff] %vm1274_vm4, %v1249_v8  ;;  %v1030_v61 = vsel %vm1009_vm2, %v997_v55, %v981_v54  ;;  %v1014_v62 = vsel %vm1009_vm2, %v981_v54, %v997_v55  ;;  %v460_v63 = vmul.f32 %v2133_v21, %v2321_v2 }
  0xdd   : > { %v938_v60 = vadd.f32 %v906_v11, %v870_v53  ;;  %v939_v0 = vadd.f32 %v907_v5, %v871_v56  ;;  %v1050_v6 = vmul.f32 %v2128_v19, %v1030_v61  ;;  %v699_v9 = vadd.f32 %v667_v58, %v631_v57 }
  0xde   : > { %v461_v14 = vmul.f32 %v2133_v21, %v2326_v7  ;;  %v496_v13 = vmul.f32 %v2135_v22, %v2381_v4  ;;  %v497_v15 = vmul.f32 %v2135_v22, %v2384_v10  ;;  %v564_v16 = vmul.f32 %v2137_v23, %v2437_v30 }
  0xdf   : > { %v1110_v3 = vrot.slane %v938_v60, 1  ;;  %v1082_v17 = vadd.f32 %v1050_v6, %v766_v52  ;;  %v1126_v18 = vrot.slane %v939_v0, 1  ;;  %v767_v31 = vadd.f32 %v735_v59, %v699_v9 }
  0xe0   : > { %v565_v32 = vmul.f32 %v2137_v23, %v2442_v12  ;;  %v528_v34 = vadd.f32 %v496_v13, %v460_v63  ;;  %v529_v36 = vadd.f32 %v497_v15, %v461_v14  ;;  %v632_v37 = vmul.f32 %v2139_v24, %v2321_v2  ;;  %v2500_v13 = vld [vmem:[%s2092_s30 + $0x78] sm:$0xff] }
  0xe1   : > { %v668_v38 = vmul.f32 %v2141_v25, %v2381_v4  ;;  %v1143_v39 = vsel %vm1138_vm3, %v1110_v3, %v1126_v18  ;;  %v1083_v40 = vadd.f32 %v1014_v62, %v767_v31  ;;  %v1159_v41 = vsel %vm1138_vm3, %v1126_v18, %v1110_v3  ;;  %v2497_v3 = vld [vmem:[%s2092_s30 + $0x70] sm:$0xff] }
  0xe2   : > { %v736_v42 = vmul.f32 %v2143_v26, %v2437_v30  ;;  %v1211_v43 = vadd.f32 %v1143_v39, %v1082_v17  ;;  %v1180_v44 = vmul.f32 %v2131_v20, %v1159_v41  ;;  %v596_v45 = vadd.f32 %v564_v16, %v528_v34 }
  0xe3   : > { %v597_v46 = vadd.f32 %v565_v32, %v529_v36  ;;  %v700_v47 = vadd.f32 %v668_v38, %v632_v37  ;;  %v804_v48 = vmul.f32 %v2145_v27, %v2321_v2  ;;  %v805_v49 = vmul.f32 %v2145_v27, %v2326_v7 }
  0xe4   : > { %v840_v50 = vmul.f32 %v2147_v28, %v2381_v4  ;;  %v1250_v51 = vadd.f32 %v2218_v33, %v1211_v43  ;;  %v1212_v52 = vadd.f32 %v1180_v44, %v1083_v40  ;;  %v841_v29 = vmul.f32 %v2147_v28, %v2384_v10 }
  0xe5   : > { %v908_v11 = vmul.f32 %v2162_v35, %v2437_v30  ;;  %v768_v5 = vadd.f32 %v736_v42, %v700_v47  ;;  %v909_v2 = vmul.f32 %v2162_v35, %v2442_v12  ;;  %v982_v53 = vrot.slane %v596_v45, 7 }
  0xe6   : > { %v872_v8 = vadd.f32 %v840_v50, %v804_v48  ;;  %1283 = vst.msk [vmem:[%s2243_s12 + $0x40] sm:$0xff] %vm1274_vm4, %v1250_v51  ;;  %v1251_v54 = vadd.f32 %v2218_v33, %v1212_v52  ;;  %v873_v55 = vadd.f32 %v841_v29, %v805_v49  ;;  %v998_v56 = vrot.slane %v597_v46, 7 }
  0xe7   : > { %v633_v57 = vmul.f32 %v2139_v24, %v2326_v7  ;;  %v669_v59 = vmul.f32 %v2141_v25, %v2384_v10  ;;  %v737_v60 = vmul.f32 %v2143_v26, %v2442_v12  ;;  %v462_v61 = vmul.f32 %v2133_v21, %v2381_v4 }
  0xe8   : > { %v940_v58 = vadd.f32 %v908_v11, %v872_v8  ;;  %1284 = vst.msk [vmem:[%s2243_s12 + $0x48] sm:$0xff] %vm1274_vm4, %v1251_v54  ;;  %v941_v62 = vadd.f32 %v909_v2, %v873_v55  ;;  %v1031_v63 = vsel %vm1009_vm2, %v998_v56, %v982_v53  ;;  %v1015_v0 = vsel %vm1009_vm2, %v982_v53, %v998_v56 }
  0xe9   : > { %v463_v7 = vmul.f32 %v2133_v21, %v2384_v10  ;;  %v1052_v6 = vmul.f32 %v2128_v19, %v1031_v63  ;;  %v701_v14 = vadd.f32 %v669_v59, %v633_v57  ;;  %v498_v15 = vmul.f32 %v2135_v22, %v2437_v30 }
  0xea   : > { %v1111_v9 = vrot.slane %v940_v58, 1  ;;  %v1127_v16 = vrot.slane %v941_v62, 1  ;;  %v499_v17 = vmul.f32 %v2135_v22, %v2442_v12  ;;  %v566_v18 = vmul.f32 %v2137_v23, %v2497_v3 }
  0xeb   : > { %v567_v31 = vmul.f32 %v2137_v23, %v2500_v13  ;;  %v1084_v32 = vadd.f32 %v1052_v6, %v768_v5  ;;  %v769_v34 = vadd.f32 %v737_v60, %v701_v14  ;;  %v530_v36 = vadd.f32 %v498_v15, %v462_v61  ;;  %v2553_v6 = vld [vmem:[%s2092_s30 + $0x80] sm:$0xff]  ;;  %v2558_v15 = vld [vmem:[%s2092_s30 + $0x88] sm:$0xff] }
  0xec   : > { %v634_v37 = vmul.f32 %v2139_v24, %v2381_v4  ;;  %v1144_v38 = vsel %vm1138_vm3, %v1111_v9, %v1127_v16  ;;  %v1160_v39 = vsel %vm1138_vm3, %v1127_v16, %v1111_v9  ;;  %v531_v40 = vadd.f32 %v499_v17, %v463_v7 }
  0xed   : > { %v670_v41 = vmul.f32 %v2141_v25, %v2437_v30  ;;  %v1213_v42 = vadd.f32 %v1144_v38, %v1084_v32  ;;  %v1085_v43 = vadd.f32 %v1015_v0, %v769_v34  ;;  %v1182_v44 = vmul.f32 %v2131_v20, %v1160_v39 }
  0xee   : > { %v598_v45 = vadd.f32 %v566_v18, %v530_v36  ;;  %v599_v46 = vadd.f32 %v567_v31, %v531_v40  ;;  %v738_v48 = vmul.f32 %v2143_v26, %v2497_v3  ;;  %v806_v49 = vmul.f32 %v2145_v27, %v2381_v4 }
  0xef   : > { %v702_v47 = vadd.f32 %v670_v41, %v634_v37  ;;  %v1252_v50 = vadd.f32 %v2218_v33, %v1213_v42  ;;  %v1214_v51 = vadd.f32 %v1182_v44, %v1085_v43  ;;  %v807_v52 = vmul.f32 %v2145_v27, %v2384_v10 }
  0xf0   : > { %v842_v29 = vmul.f32 %v2147_v28, %v2437_v30  ;;  %v843_v5 = vmul.f32 %v2147_v28, %v2442_v12  ;;  %v910_v8 = vmul.f32 %v2162_v35, %v2497_v3  ;;  %v911_v4 = vmul.f32 %v2162_v35, %v2500_v13 }
  0xf1   : > { %v770_v11 = vadd.f32 %v738_v48, %v702_v47  ;;  %1285 = vst.msk [vmem:[%s2243_s12 + $0x50] sm:$0xff] %vm1274_vm4, %v1252_v50  ;;  %v1253_v2 = vadd.f32 %v2218_v33, %v1214_v51  ;;  %v983_v54 = vrot.slane %v598_v45, 7  ;;  %v999_v55 = vrot.slane %v599_v46, 7 }
  0xf2   : > { %v874_v53 = vadd.f32 %v842_v29, %v806_v49  ;;  %v875_v56 = vadd.f32 %v843_v5, %v807_v52  ;;  %v635_v57 = vmul.f32 %v2139_v24, %v2384_v10  ;;  %v671_v58 = vmul.f32 %v2141_v25, %v2442_v12 }
  0xf3   : > { %v739_v59 = vmul.f32 %v2143_v26, %v2500_v13  ;;  %1286 = vst.msk [vmem:[%s2243_s12 + $0x58] sm:$0xff] %vm1274_vm4, %v1253_v2  ;;  %v1032_v61 = vsel %vm1009_vm2, %v999_v55, %v983_v54  ;;  %v1016_v62 = vsel %vm1009_vm2, %v983_v54, %v999_v55  ;;  %v464_v63 = vmul.f32 %v2133_v21, %v2437_v30 }
  0xf4   : > { %v942_v60 = vadd.f32 %v910_v8, %v874_v53  ;;  %v943_v0 = vadd.f32 %v911_v4, %v875_v56  ;;  %v1054_v10 = vmul.f32 %v2128_v19, %v1032_v61  ;;  %v703_v7 = vadd.f32 %v671_v58, %v635_v57 }
  0xf5   : > { %v465_v9 = vmul.f32 %v2133_v21, %v2442_v12  ;;  %v500_v16 = vmul.f32 %v2135_v22, %v2497_v3  ;;  %v501_v17 = vmul.f32 %v2135_v22, %v2500_v13  ;;  %v568_v18 = vmul.f32 %v2137_v23, %v2553_v6 }
  0xf6   : > { %v1112_v14 = vrot.slane %v942_v60, 1  ;;  %v1086_v31 = vadd.f32 %v1054_v10, %v770_v11  ;;  %v1128_v32 = vrot.slane %v943_v0, 1  ;;  %v771_v34 = vadd.f32 %v739_v59, %v703_v7 }
  0xf7   : > { %v569_v36 = vmul.f32 %v2137_v23, %v2558_v15  ;;  %v532_v37 = vadd.f32 %v500_v16, %v464_v63  ;;  %v533_v38 = vadd.f32 %v501_v17, %v465_v9  ;;  %v636_v39 = vmul.f32 %v2139_v24, %v2437_v30  ;;  %v2616_v16 = vld [vmem:[%s2092_s30 + $0x98] sm:$0xff] }
  0xf8   : > { %v672_v40 = vmul.f32 %v2141_v25, %v2497_v3  ;;  %v1145_v41 = vsel %vm1138_vm3, %v1112_v14, %v1128_v32  ;;  %v1087_v42 = vadd.f32 %v1016_v62, %v771_v34  ;;  %v1161_v43 = vsel %vm1138_vm3, %v1128_v32, %v1112_v14  ;;  %v2613_v14 = vld [vmem:[%s2092_s30 + $0x90] sm:$0xff] }
  0xf9   : > { %v740_v44 = vmul.f32 %v2143_v26, %v2553_v6  ;;  %v1215_v45 = vadd.f32 %v1145_v41, %v1086_v31  ;;  %v1184_v46 = vmul.f32 %v2131_v20, %v1161_v43  ;;  %v600_v47 = vadd.f32 %v568_v18, %v532_v37 }
  0xfa   : > { %v601_v48 = vadd.f32 %v569_v36, %v533_v38  ;;  %v704_v49 = vadd.f32 %v672_v40, %v636_v39  ;;  %v808_v50 = vmul.f32 %v2145_v27, %v2437_v30  ;;  %v809_v51 = vmul.f32 %v2145_v27, %v2442_v12 }
  0xfb   : > { %v844_v52 = vmul.f32 %v2147_v28, %v2497_v3  ;;  %v1254_v29 = vadd.f32 %v2218_v33, %v1215_v45  ;;  %v1216_v11 = vadd.f32 %v1184_v46, %v1087_v42  ;;  %v845_v5 = vmul.f32 %v2147_v28, %v2500_v13 }
  0xfc   : > { %v912_v8 = vmul.f32 %v2162_v35, %v2553_v6  ;;  %v772_v4 = vadd.f32 %v740_v44, %v704_v49  ;;  %v913_v30 = vmul.f32 %v2162_v35, %v2558_v15  ;;  %v984_v53 = vrot.slane %v600_v47, 7 }
  0xfd   : > { %v876_v2 = vadd.f32 %v844_v52, %v808_v50  ;;  %1287 = vst.msk [vmem:[%s2243_s12 + $0x60] sm:$0xff] %vm1274_vm4, %v1254_v29  ;;  %v1255_v54 = vadd.f32 %v2218_v33, %v1216_v11  ;;  %v877_v55 = vadd.f32 %v845_v5, %v809_v51  ;;  %v1000_v56 = vrot.slane %v601_v48, 7 }
  0xfe   : > { %v637_v57 = vmul.f32 %v2139_v24, %v2442_v12  ;;  %v673_v59 = vmul.f32 %v2141_v25, %v2500_v13  ;;  %v741_v60 = vmul.f32 %v2143_v26, %v2558_v15  ;;  %v466_v61 = vmul.f32 %v2133_v21, %v2497_v3 }
  0xff   : > { %v944_v58 = vadd.f32 %v912_v8, %v876_v2  ;;  %1288 = vst.msk [vmem:[%s2243_s12 + $0x68] sm:$0xff] %vm1274_vm4, %v1255_v54  ;;  %v945_v62 = vadd.f32 %v913_v30, %v877_v55  ;;  %v1033_v63 = vsel %vm1009_vm2, %v1000_v56, %v984_v53  ;;  %v1017_v0 = vsel %vm1009_vm2, %v984_v53, %v1000_v56 }
 0x100   : > { %v467_v12 = vmul.f32 %v2133_v21, %v2500_v13  ;;  %v1056_v10 = vmul.f32 %v2128_v19, %v1033_v63  ;;  %v705_v9 = vadd.f32 %v673_v59, %v637_v57  ;;  %v502_v17 = vmul.f32 %v2135_v22, %v2553_v6 }
 0x101   : > { %v1113_v7 = vrot.slane %v944_v58, 1  ;;  %v1129_v18 = vrot.slane %v945_v62, 1  ;;  %v503_v31 = vmul.f32 %v2135_v22, %v2558_v15  ;;  %v570_v32 = vmul.f32 %v2137_v23, %v2613_v14 }
 0x102   : > { %v571_v34 = vmul.f32 %v2137_v23, %v2616_v16  ;;  %v1088_v36 = vadd.f32 %v1056_v10, %v772_v4  ;;  %v773_v37 = vadd.f32 %v741_v60, %v705_v9  ;;  %v534_v38 = vadd.f32 %v502_v17, %v466_v61  ;;  %v2669_v10 = vld [vmem:[%s2092_s30 + $0xa0] sm:$0xff]  ;;  %v2674_v17 = vld [vmem:[%s2092_s30 + $0xa8] sm:$0xff] }
 0x103   : > { %v638_v39 = vmul.f32 %v2139_v24, %v2497_v3  ;;  %v1146_v40 = vsel %vm1138_vm3, %v1113_v7, %v1129_v18  ;;  %v1162_v41 = vsel %vm1138_vm3, %v1129_v18, %v1113_v7  ;;  %v535_v42 = vadd.f32 %v503_v31, %v467_v12 }
 0x104   : > { %v674_v43 = vmul.f32 %v2141_v25, %v2553_v6  ;;  %v1217_v44 = vadd.f32 %v1146_v40, %v1088_v36  ;;  %v1089_v45 = vadd.f32 %v1017_v0, %v773_v37  ;;  %v1186_v46 = vmul.f32 %v2131_v20, %v1162_v41 }
 0x105   : > { %v602_v47 = vadd.f32 %v570_v32, %v534_v38  ;;  %v603_v48 = vadd.f32 %v571_v34, %v535_v42  ;;  %v742_v50 = vmul.f32 %v2143_v26, %v2613_v14  ;;  %v810_v51 = vmul.f32 %v2145_v27, %v2497_v3 }
 0x106   : > { %v706_v49 = vadd.f32 %v674_v43, %v638_v39  ;;  %v1256_v52 = vadd.f32 %v2218_v33, %v1217_v44  ;;  %v1218_v29 = vadd.f32 %v1186_v46, %v1089_v45  ;;  %v811_v11 = vmul.f32 %v2145_v27, %v2500_v13 }
 0x107   : > { %v846_v5 = vmul.f32 %v2147_v28, %v2553_v6  ;;  %v847_v4 = vmul.f32 %v2147_v28, %v2558_v15  ;;  %v914_v2 = vmul.f32 %v2162_v35, %v2613_v14  ;;  %v915_v3 = vmul.f32 %v2162_v35, %v2616_v16 }
 0x108   : > { %v774_v8 = vadd.f32 %v742_v50, %v706_v49  ;;  %1289 = vst.msk [vmem:[%s2243_s12 + $0x70] sm:$0xff] %vm1274_vm4, %v1256_v52  ;;  %v1257_v30 = vadd.f32 %v2218_v33, %v1218_v29  ;;  %v985_v54 = vrot.slane %v602_v47, 7  ;;  %v1001_v55 = vrot.slane %v603_v48, 7 }
 0x109   : > { %v878_v53 = vadd.f32 %v846_v5, %v810_v51  ;;  %v879_v56 = vadd.f32 %v847_v4, %v811_v11  ;;  %v639_v57 = vmul.f32 %v2139_v24, %v2500_v13  ;;  %v675_v58 = vmul.f32 %v2141_v25, %v2558_v15 }
 0x10a   : > { %v743_v59 = vmul.f32 %v2143_v26, %v2616_v16  ;;  %1290 = vst.msk [vmem:[%s2243_s12 + $0x78] sm:$0xff] %vm1274_vm4, %v1257_v30  ;;  %v1034_v61 = vsel %vm1009_vm2, %v1001_v55, %v985_v54  ;;  %v1018_v62 = vsel %vm1009_vm2, %v985_v54, %v1001_v55  ;;  %v468_v63 = vmul.f32 %v2133_v21, %v2553_v6 }
 0x10b   : > { %v946_v60 = vadd.f32 %v914_v2, %v878_v53  ;;  %v947_v0 = vadd.f32 %v915_v3, %v879_v56  ;;  %v1058_v13 = vmul.f32 %v2128_v19, %v1034_v61  ;;  %v707_v12 = vadd.f32 %v675_v58, %v639_v57 }
 0x10c   : > { %v469_v7 = vmul.f32 %v2133_v21, %v2558_v15  ;;  %v504_v18 = vmul.f32 %v2135_v22, %v2613_v14  ;;  %v505_v31 = vmul.f32 %v2135_v22, %v2616_v16  ;;  %v572_v32 = vmul.f32 %v2137_v23, %v2669_v10 }
 0x10d   : > { %v1114_v9 = vrot.slane %v946_v60, 1  ;;  %v1090_v34 = vadd.f32 %v1058_v13, %v774_v8  ;;  %v1130_v36 = vrot.slane %v947_v0, 1  ;;  %v775_v37 = vadd.f32 %v743_v59, %v707_v12 }
 0x10e   : > { %v573_v38 = vmul.f32 %v2137_v23, %v2674_v17  ;;  %v536_v39 = vadd.f32 %v504_v18, %v468_v63  ;;  %v537_v40 = vadd.f32 %v505_v31, %v469_v7  ;;  %v640_v41 = vmul.f32 %v2139_v24, %v2553_v6  ;;  %v2729_v7 = vld [vmem:[%s2092_s30 + $0xb0] sm:$0xff] }
 0x10f   : > { %v676_v42 = vmul.f32 %v2141_v25, %v2613_v14  ;;  %v1147_v43 = vsel %vm1138_vm3, %v1114_v9, %v1130_v36  ;;  %v1091_v44 = vadd.f32 %v1018_v62, %v775_v37  ;;  %v1163_v45 = vsel %vm1138_vm3, %v1130_v36, %v1114_v9  ;;  %v2732_v9 = vld [vmem:[%s2092_s30 + $0xb8] sm:$0xff] }
 0x110   : > { %v744_v46 = vmul.f32 %v2143_v26, %v2669_v10  ;;  %v1219_v47 = vadd.f32 %v1147_v43, %v1090_v34  ;;  %v1188_v48 = vmul.f32 %v2131_v20, %v1163_v45  ;;  %v604_v49 = vadd.f32 %v572_v32, %v536_v39 }
 0x111   : > { %v605_v50 = vadd.f32 %v573_v38, %v537_v40  ;;  %v708_v51 = vadd.f32 %v676_v42, %v640_v41  ;;  %v812_v52 = vmul.f32 %v2145_v27, %v2553_v6  ;;  %v813_v29 = vmul.f32 %v2145_v27, %v2558_v15 }
 0x112   : > { %v848_v11 = vmul.f32 %v2147_v28, %v2613_v14  ;;  %v1258_v5 = vadd.f32 %v2218_v33, %v1219_v47  ;;  %v1220_v8 = vadd.f32 %v1188_v48, %v1091_v44  ;;  %v849_v4 = vmul.f32 %v2147_v28, %v2616_v16 }
 0x113   : > { %v916_v2 = vmul.f32 %v2162_v35, %v2669_v10  ;;  %v776_v3 = vadd.f32 %v744_v46, %v708_v51  ;;  %v917_v6 = vmul.f32 %v2162_v35, %v2674_v17  ;;  %v986_v53 = vrot.slane %v604_v49, 7 }
 0x114   : > { %v880_v30 = vadd.f32 %v848_v11, %v812_v52  ;;  %1291 = vst.msk [vmem:[%s2243_s12 + $0x80] sm:$0xff] %vm1274_vm4, %v1258_v5  ;;  %v1259_v54 = vadd.f32 %v2218_v33, %v1220_v8  ;;  %v881_v55 = vadd.f32 %v849_v4, %v813_v29  ;;  %v1002_v56 = vrot.slane %v605_v50, 7 }
 0x115   : > { %v641_v57 = vmul.f32 %v2139_v24, %v2558_v15  ;;  %v677_v59 = vmul.f32 %v2141_v25, %v2616_v16  ;;  %v745_v60 = vmul.f32 %v2143_v26, %v2674_v17  ;;  %v470_v35 = vmul.f32 %v2133_v21, %v2613_v14 }
 0x116   : > { %v948_v58 = vadd.f32 %v916_v2, %v880_v30  ;;  %1292 = vst.msk [vmem:[%s2243_s12 + $0x88] sm:$0xff] %vm1274_vm4, %v1259_v54  ;;  %v949_v61 = vadd.f32 %v917_v6, %v881_v55  ;;  %v1035_v62 = vsel %vm1009_vm2, %v1002_v56, %v986_v53  ;;  %v1019_v63 = vsel %vm1009_vm2, %v986_v53, %v1002_v56 }
 0x117   : > { %v471_v15 = vmul.f32 %v2133_v21, %v2616_v16  ;;  %v1060_v0 = vmul.f32 %v2128_v19, %v1035_v62  ;;  %v709_v12 = vadd.f32 %v677_v59, %v641_v57  ;;  %v506_v18 = vmul.f32 %v2135_v22, %v2669_v10 }
 0x118   : > { %v1115_v13 = vrot.slane %v948_v58, 1  ;;  %v1131_v31 = vrot.slane %v949_v61, 1  ;;  %v507_v32 = vmul.f32 %v2135_v22, %v2674_v17  ;;  %v574_v34 = vmul.f32 %v2137_v23, %v2729_v7 }
 0x119   : > { %v575_v36 = vmul.f32 %v2137_v23, %v2732_v9  ;;  %v1092_v37 = vadd.f32 %v1060_v0, %v776_v3  ;;  %v777_v38 = vadd.f32 %v745_v60, %v709_v12  ;;  %v538_v39 = vadd.f32 %v506_v18, %v470_v35  ;;  %v2762_v3 = vld [vmem:[#allocation8 + $0x8] ss:$0 sm:$0xff] }
 0x11a   : > { %v642_v40 = vmul.f32 %v2139_v24, %v2613_v14  ;;  %v1148_v41 = vsel %vm1138_vm3, %v1115_v13, %v1131_v31  ;;  %v1164_v42 = vsel %vm1138_vm3, %v1131_v31, %v1115_v13  ;;  %v539_v43 = vadd.f32 %v507_v32, %v471_v15  ;;  %v2787_v15 = vld [vmem:[%s2092_s30 + $0xc0] sm:$0xff]  ;;  %v2792_v12 = vld [vmem:[%s2092_s30 + $0xc8] sm:$0xff] }
 0x11b   : > { %v678_v44 = vmul.f32 %v2141_v25, %v2669_v10  ;;  %v1221_v45 = vadd.f32 %v1148_v41, %v1092_v37  ;;  %v1093_v46 = vadd.f32 %v1019_v63, %v777_v38  ;;  %v1190_v47 = vmul.f32 %v2131_v20, %v1164_v42 }
 0x11c   : > { %v606_v48 = vadd.f32 %v574_v34, %v538_v39  ;;  %v607_v49 = vadd.f32 %v575_v36, %v539_v43  ;;  %v746_v51 = vmul.f32 %v2143_v26, %v2729_v7  ;;  %v814_v52 = vmul.f32 %v2145_v27, %v2613_v14 }
 0x11d   : > { %v710_v50 = vadd.f32 %v678_v44, %v642_v40  ;;  %v1260_v29 = vadd.f32 %v2218_v33, %v1221_v45  ;;  %v1222_v11 = vadd.f32 %v1190_v47, %v1093_v46  ;;  %v815_v5 = vmul.f32 %v2145_v27, %v2616_v16 }
 0x11e   : > { %v850_v8 = vmul.f32 %v2147_v28, %v2669_v10  ;;  %v851_v2 = vmul.f32 %v2147_v28, %v2674_v17  ;;  %v918_v30 = vmul.f32 %v2762_v3, %v2729_v7  ;;  %v919_v14 = vmul.f32 %v2762_v3, %v2732_v9 }
 0x11f   : > { %v778_v4 = vadd.f32 %v746_v51, %v710_v50  ;;  %1293 = vst.msk [vmem:[%s2243_s12 + $0x90] sm:$0xff] %vm1274_vm4, %v1260_v29  ;;  %v1261_v6 = vadd.f32 %v2218_v33, %v1222_v11  ;;  %v987_v54 = vrot.slane %v606_v48, 7  ;;  %v1003_v55 = vrot.slane %v607_v49, 7 }
 0x120   : > { %v882_v53 = vadd.f32 %v850_v8, %v814_v52  ;;  %v883_v56 = vadd.f32 %v851_v2, %v815_v5  ;;  %v643_v57 = vmul.f32 %v2139_v24, %v2616_v16  ;;  %v679_v58 = vmul.f32 %v2141_v25, %v2674_v17  ;;  %v2822_v5 = vld [vmem:[%s3140_s4] ss:$0 sm:$0xff] }
 0x121   : > { %v747_v59 = vmul.f32 %v2143_v26, %v2732_v9  ;;  %1294 = vst.msk [vmem:[%s2243_s12 + $0x98] sm:$0xff] %vm1274_vm4, %v1261_v6  ;;  %v1036_v33 = vsel %vm1009_vm2, %v1003_v55, %v987_v54  ;;  %v1020_v35 = vsel %vm1009_vm2, %v987_v54, %v1003_v55  ;;  %v472_v61 = vmul.f32 %v2133_v21, %v2669_v10 }
 0x122   : > { %v950_v60 = vadd.f32 %v918_v30, %v882_v53  ;;  %v951_v62 = vadd.f32 %v919_v14, %v883_v56  ;;  %v1062_v16 = vmul.f32 %v2128_v19, %v1036_v33  ;;  %v711_v63 = vadd.f32 %v679_v58, %v643_v57 }
 0x123   : > { %v473_v0 = vmul.f32 %v2133_v21, %v2674_v17  ;;  %v508_v18 = vmul.f32 %v2135_v22, %v2729_v7  ;;  %v509_v31 = vmul.f32 %v2135_v22, %v2732_v9  ;;  %v576_v32 = vmul.f32 %v2137_v23, %v2787_v15 }
 0x124   : > { %v1116_v13 = vrot.slane %v950_v60, 1  ;;  %v1094_v34 = vadd.f32 %v1062_v16, %v778_v4  ;;  %v1132_v36 = vrot.slane %v951_v62, 1  ;;  %v779_v37 = vadd.f32 %v747_v59, %v711_v63 }
 0x125   : > { %v577_v38 = vmul.f32 %v2137_v23, %v2792_v12  ;;  %v540_v39 = vadd.f32 %v508_v18, %v472_v61  ;;  %v541_v40 = vadd.f32 %v509_v31, %v473_v0  ;;  %v644_v41 = vmul.f32 %v2139_v24, %v2669_v10  ;;  %v2855_v18 = vld [vmem:[%s2092_s30 + $0xd8] sm:$0xff] }
 0x126   : > { %v680_v42 = vmul.f32 %v2141_v25, %v2729_v7  ;;  %v1149_v43 = vsel %vm1138_vm3, %v1116_v13, %v1132_v36  ;;  %v1095_v44 = vadd.f32 %v1020_v35, %v779_v37  ;;  %v1165_v45 = vsel %vm1138_vm3, %v1132_v36, %v1116_v13  ;;  %v2852_v13 = vld [vmem:[%s2092_s30 + $0xd0] sm:$0xff] }
 0x127   : > { %v748_v46 = vmul.f32 %v2143_v26, %v2787_v15  ;;  %v1223_v47 = vadd.f32 %v1149_v43, %v1094_v34  ;;  %v1192_v48 = vmul.f32 %v2131_v20, %v1165_v45  ;;  %v608_v49 = vadd.f32 %v576_v32, %v540_v39 }
 0x128   : > { %v609_v50 = vadd.f32 %v577_v38, %v541_v40  ;;  %v712_v51 = vadd.f32 %v680_v42, %v644_v41  ;;  %v816_v52 = vmul.f32 %v2145_v27, %v2669_v10  ;;  %v817_v29 = vmul.f32 %v2145_v27, %v2674_v17 }
 0x129   : > { %v852_v11 = vmul.f32 %v2147_v28, %v2729_v7  ;;  %v1262_v8 = vadd.f32 %v2822_v5, %v1223_v47  ;;  %v1224_v4 = vadd.f32 %v1192_v48, %v1095_v44  ;;  %v853_v2 = vmul.f32 %v2147_v28, %v2732_v9 }
 0x12a   : > { %v920_v10 = vmul.f32 %v2762_v3, %v2787_v15  ;;  %v780_v30 = vadd.f32 %v748_v46, %v712_v51  ;;  %v921_v6 = vmul.f32 %v2762_v3, %v2792_v12  ;;  %v988_v53 = vrot.slane %v608_v49, 7 }
 0x12b   : > { %v884_v14 = vadd.f32 %v852_v11, %v816_v52  ;;  %1295 = vst.msk [vmem:[%s2243_s12 + $0xa0] sm:$0xff] %vm1274_vm4, %v1262_v8  ;;  %v1263_v54 = vadd.f32 %v2822_v5, %v1224_v4  ;;  %v885_v55 = vadd.f32 %v853_v2, %v817_v29  ;;  %v1004_v56 = vrot.slane %v609_v50, 7 }
 0x12c   : > { %v645_v57 = vmul.f32 %v2139_v24, %v2674_v17  ;;  %v681_v59 = vmul.f32 %v2141_v25, %v2732_v9  ;;  %v749_v60 = vmul.f32 %v2143_v26, %v2792_v12  ;;  %v474_v33 = vmul.f32 %v2133_v21, %v2729_v7 }
 0x12d   : > { %v952_v58 = vadd.f32 %v920_v10, %v884_v14  ;;  %1296 = vst.msk [vmem:[%s2243_s12 + $0xa8] sm:$0xff] %vm1274_vm4, %v1263_v54  ;;  %v953_v35 = vadd.f32 %v921_v6, %v885_v55  ;;  %v1037_v61 = vsel %vm1009_vm2, %v1004_v56, %v988_v53  ;;  %v1021_v62 = vsel %vm1009_vm2, %v988_v53, %v1004_v56 }
 0x12e   : > { %v475_v17 = vmul.f32 %v2133_v21, %v2732_v9  ;;  %v1064_v16 = vmul.f32 %v2128_v19, %v1037_v61  ;;  %v713_v0 = vadd.f32 %v681_v59, %v645_v57  ;;  %v510_v31 = vmul.f32 %v2135_v22, %v2787_v15 }
 0x12f   : > { %v1117_v63 = vrot.slane %v952_v58, 1  ;;  %v1133_v32 = vrot.slane %v953_v35, 1  ;;  %v511_v34 = vmul.f32 %v2135_v22, %v2792_v12  ;;  %v578_v36 = vmul.f32 %v2137_v23, %v2852_v13 }
 0x130   : > { %v579_v37 = vmul.f32 %v2137_v23, %v2855_v18  ;;  %v1096_v38 = vadd.f32 %v1064_v16, %v780_v30  ;;  %v781_v39 = vadd.f32 %v749_v60, %v713_v0  ;;  %v542_v40 = vadd.f32 %v510_v31, %v474_v33  ;;  %v2908_v16 = vld [vmem:[%s2092_s30 + $0xe0] sm:$0xff]  ;;  %v2913_v31 = vld [vmem:[%s2092_s30 + $0xe8] sm:$0xff] }
 0x131   : > { %v646_v41 = vmul.f32 %v2139_v24, %v2729_v7  ;;  %v1150_v42 = vsel %vm1138_vm3, %v1117_v63, %v1133_v32  ;;  %v1166_v43 = vsel %vm1138_vm3, %v1133_v32, %v1117_v63  ;;  %v543_v44 = vadd.f32 %v511_v34, %v475_v17 }
 0x132   : > { %v682_v45 = vmul.f32 %v2141_v25, %v2787_v15  ;;  %v1225_v46 = vadd.f32 %v1150_v42, %v1096_v38  ;;  %v1097_v47 = vadd.f32 %v1021_v62, %v781_v39  ;;  %v1194_v48 = vmul.f32 %v2131_v20, %v1166_v43 }
 0x133   : > { %v610_v49 = vadd.f32 %v578_v36, %v542_v40  ;;  %v611_v50 = vadd.f32 %v579_v37, %v543_v44  ;;  %v750_v52 = vmul.f32 %v2143_v26, %v2852_v13  ;;  %v818_v29 = vmul.f32 %v2145_v27, %v2729_v7 }
 0x134   : > { %v714_v51 = vadd.f32 %v682_v45, %v646_v41  ;;  %v1264_v11 = vadd.f32 %v2822_v5, %v1225_v46  ;;  %v1226_v8 = vadd.f32 %v1194_v48, %v1097_v47  ;;  %v819_v4 = vmul.f32 %v2145_v27, %v2732_v9 }
 0x135   : > { %v854_v2 = vmul.f32 %v2147_v28, %v2787_v15  ;;  %v855_v30 = vmul.f32 %v2147_v28, %v2792_v12  ;;  %v922_v14 = vmul.f32 %v2762_v3, %v2852_v13  ;;  %v923_v7 = vmul.f32 %v2762_v3, %v2855_v18 }
 0x136   : > { %v782_v10 = vadd.f32 %v750_v52, %v714_v51  ;;  %1297 = vst.msk [vmem:[%s2243_s12 + $0xb0] sm:$0xff] %vm1274_vm4, %v1264_v11  ;;  %v1265_v6 = vadd.f32 %v2822_v5, %v1226_v8  ;;  %v989_v54 = vrot.slane %v610_v49, 7  ;;  %v1005_v55 = vrot.slane %v611_v50, 7 }
 0x137   : > { %v886_v53 = vadd.f32 %v854_v2, %v818_v29  ;;  %v887_v56 = vadd.f32 %v855_v30, %v819_v4  ;;  %v647_v57 = vmul.f32 %v2139_v24, %v2732_v9  ;;  %v683_v58 = vmul.f32 %v2141_v25, %v2792_v12 }
 0x138   : > { %v751_v59 = vmul.f32 %v2143_v26, %v2855_v18  ;;  %1298 = vst.msk [vmem:[%s2243_s12 + $0xb8] sm:$0xff] %vm1274_vm4, %v1265_v6  ;;  %v1038_v33 = vsel %vm1009_vm2, %v1005_v55, %v989_v54  ;;  %v1022_v35 = vsel %vm1009_vm2, %v989_v54, %v1005_v55  ;;  %v476_v61 = vmul.f32 %v2133_v21, %v2787_v15 }
 0x139   : > { %v954_v60 = vadd.f32 %v922_v14, %v886_v53  ;;  %v955_v62 = vadd.f32 %v923_v7, %v887_v56  ;;  %v1066_v9 = vmul.f32 %v2128_v19, %v1038_v33  ;;  %v715_v17 = vadd.f32 %v683_v58, %v647_v57 }
 0x13a   : > { %v477_v63 = vmul.f32 %v2133_v21, %v2792_v12  ;;  %v512_v32 = vmul.f32 %v2135_v22, %v2852_v13  ;;  %v513_v34 = vmul.f32 %v2135_v22, %v2855_v18  ;;  %v580_v36 = vmul.f32 %v2137_v23, %v2908_v16 }
 0x13b   : > { %v1118_v0 = vrot.slane %v954_v60, 1  ;;  %v1098_v37 = vadd.f32 %v1066_v9, %v782_v10  ;;  %v1134_v38 = vrot.slane %v955_v62, 1  ;;  %v783_v39 = vadd.f32 %v751_v59, %v715_v17 }
 0x13c   : > { %v581_v40 = vmul.f32 %v2137_v23, %v2913_v31  ;;  %v544_v41 = vadd.f32 %v512_v32, %v476_v61  ;;  %v545_v42 = vadd.f32 %v513_v34, %v477_v63  ;;  %v648_v43 = vmul.f32 %v2139_v24, %v2787_v15  ;;  %v2971_v32 = vld [vmem:[%s2092_s30 + $0xf8] sm:$0xff] }
 0x13d   : > { %v684_v44 = vmul.f32 %v2141_v25, %v2852_v13  ;;  %v1151_v45 = vsel %vm1138_vm3, %v1118_v0, %v1134_v38  ;;  %v1099_v46 = vadd.f32 %v1022_v35, %v783_v39  ;;  %v1167_v47 = vsel %vm1138_vm3, %v1134_v38, %v1118_v0  ;;  %v2968_v0 = vld [vmem:[%s2092_s30 + $0xf0] sm:$0xff] }
 0x13e   : > { %v752_v48 = vmul.f32 %v2143_v26, %v2908_v16  ;;  %v1227_v49 = vadd.f32 %v1151_v45, %v1098_v37  ;;  %v1196_v50 = vmul.f32 %v2131_v20, %v1167_v47  ;;  %v612_v51 = vadd.f32 %v580_v36, %v544_v41 }
 0x13f   : > { %v613_v52 = vadd.f32 %v581_v40, %v545_v42  ;;  %v716_v29 = vadd.f32 %v684_v44, %v648_v43  ;;  %v820_v11 = vmul.f32 %v2145_v27, %v2787_v15  ;;  %v821_v8 = vmul.f32 %v2145_v27, %v2792_v12 }
 0x140   : > { %v856_v4 = vmul.f32 %v2147_v28, %v2852_v13  ;;  %v1266_v2 = vadd.f32 %v2822_v5, %v1227_v49  ;;  %v1228_v10 = vadd.f32 %v1196_v50, %v1099_v46  ;;  %v857_v30 = vmul.f32 %v2147_v28, %v2855_v18 }
 0x141   : > { %v924_v14 = vmul.f32 %v2762_v3, %v2908_v16  ;;  %v784_v7 = vadd.f32 %v752_v48, %v716_v29  ;;  %v925_v15 = vmul.f32 %v2762_v3, %v2913_v31  ;;  %v990_v53 = vrot.slane %v612_v51, 7 }
 0x142   : > { %v888_v6 = vadd.f32 %v856_v4, %v820_v11  ;;  %1299 = vst.msk [vmem:[%s2243_s12 + $0xc0] sm:$0xff] %vm1274_vm4, %v1266_v2  ;;  %v1267_v54 = vadd.f32 %v2822_v5, %v1228_v10  ;;  %v889_v55 = vadd.f32 %v857_v30, %v821_v8  ;;  %v1006_v56 = vrot.slane %v613_v52, 7 }
 0x143   : > { %v649_v57 = vmul.f32 %v2139_v24, %v2792_v12  ;;  %v685_v59 = vmul.f32 %v2141_v25, %v2855_v18  ;;  %v753_v60 = vmul.f32 %v2143_v26, %v2913_v31  ;;  %v478_v33 = vmul.f32 %v2133_v21, %v2852_v13 }
 0x144   : > { %v956_v58 = vadd.f32 %v924_v14, %v888_v6  ;;  %1300 = vst.msk [vmem:[%s2243_s12 + $0xc8] sm:$0xff] %vm1274_vm4, %v1267_v54  ;;  %v957_v35 = vadd.f32 %v925_v15, %v889_v55  ;;  %v1039_v61 = vsel %vm1009_vm2, %v1006_v56, %v990_v53  ;;  %v1023_v62 = vsel %vm1009_vm2, %v990_v53, %v1006_v56  ;;  %v439_v15 = vld [vmem:[%s2104_s29] sm:$0xff] }
 0x145   : > { %v479_v12 = vmul.f32 %v2133_v21, %v2855_v18  ;;  %v1068_v9 = vmul.f32 %v2128_v19, %v1039_v61  ;;  %v717_v63 = vadd.f32 %v685_v59, %v649_v57  ;;  %v514_v34 = vmul.f32 %v2135_v22, %v2908_v16  ;;  %v440_v57 = vld [vmem:[%s2104_s29 + $0x8] sm:$0xff] }
 0x146   : > { %v1119_v17 = vrot.slane %v956_v58, 1  ;;  %v1135_v36 = vrot.slane %v957_v35, 1  ;;  %v515_v37 = vmul.f32 %v2135_v22, %v2913_v31  ;;  %v582_v38 = vmul.f32 %v2137_v23, %v2968_v0 }
 0x147   : > { %v583_v39 = vmul.f32 %v2137_v23, %v2971_v32  ;;  %v1100_v40 = vadd.f32 %v1068_v9, %v784_v7  ;;  %v785_v41 = vadd.f32 %v753_v60, %v717_v63  ;;  %v546_v42 = vadd.f32 %v514_v34, %v478_v33 }
 0x148   : > { %v650_v43 = vmul.f32 %v2139_v24, %v2852_v13  ;;  %v1152_v44 = vsel %vm1138_vm3, %v1119_v17, %v1135_v36  ;;  %v1168_v45 = vsel %vm1138_vm3, %v1135_v36, %v1119_v17  ;;  %v547_v46 = vadd.f32 %v515_v37, %v479_v12 }
 0x149   : > { %v686_v47 = vmul.f32 %v2141_v25, %v2908_v16  ;;  %v1229_v48 = vadd.f32 %v1152_v44, %v1100_v40  ;;  %v1101_v49 = vadd.f32 %v1023_v62, %v785_v41  ;;  %v1198_v50 = vmul.f32 %v2131_v20, %v1168_v45 }
 0x14a   : > { %v614_v51 = vadd.f32 %v582_v38, %v546_v42  ;;  %v615_v52 = vadd.f32 %v583_v39, %v547_v46  ;;  %v754_v11 = vmul.f32 %v2143_v26, %v2968_v0  ;;  %v822_v8 = vmul.f32 %v2145_v27, %v2852_v13 }
 0x14b   : > { %v718_v29 = vadd.f32 %v686_v47, %v650_v43  ;;  %v1268_v4 = vadd.f32 %v2822_v5, %v1229_v48  ;;  %v1230_v2 = vadd.f32 %v1198_v50, %v1101_v49  ;;  %v823_v10 = vmul.f32 %v2145_v27, %v2855_v18 }
 0x14c   : > { %v858_v30 = vmul.f32 %v2147_v28, %v2908_v16  ;;  %v859_v7 = vmul.f32 %v2147_v28, %v2913_v31  ;;  %v926_v6 = vmul.f32 %v2762_v3, %v2968_v0  ;;  %v927_v13 = vmul.f32 %v2762_v3, %v2971_v32 }
 0x14d   : > { %v786_v14 = vadd.f32 %v754_v11, %v718_v29  ;;  %1301 = vst.msk [vmem:[%s2243_s12 + $0xd0] sm:$0xff] %vm1274_vm4, %v1268_v4  ;;  %v1269_v53 = vadd.f32 %v2822_v5, %v1230_v2  ;;  %v991_v55 = vrot.slane %v614_v51, 7  ;;  %v1007_v56 = vrot.slane %v615_v52, 7 }
 0x14e   : > { %v890_v54 = vadd.f32 %v858_v30, %v822_v8  ;;  %v891_v58 = vadd.f32 %v859_v7, %v823_v10  ;;  %v651_v59 = vmul.f32 %v2139_v24, %v2855_v18  ;;  %v687_v60 = vmul.f32 %v2141_v25, %v2913_v31 }
 0x14f   : > { %v755_v33 = vmul.f32 %v2143_v26, %v2971_v32  ;;  %1302 = vst.msk [vmem:[%s2243_s12 + $0xd8] sm:$0xff] %vm1274_vm4, %v1269_v53  ;;  %v1040_v61 = vsel %vm1009_vm2, %v1007_v56, %v991_v55  ;;  %v1024_v62 = vsel %vm1009_vm2, %v991_v55, %v1007_v56  ;;  %v442_v12 = vmul.f32 0.0, %v439_v15 }
 0x150   : > { %v958_v35 = vadd.f32 %v926_v6, %v890_v54  ;;  %v959_v9 = vadd.f32 %v927_v13, %v891_v58  ;;  %v1070_v17 = vmul.f32 %v2128_v19, %v1040_v61  ;;  %v719_v18 = vadd.f32 %v687_v60, %v651_v59 }
 0x151   : > { %v443_v63 = vmul.f32 0.0, %v440_v57  ;;  %v480_v36 = vmul.f32 %v2133_v21, %v2908_v16  ;;  %v481_v37 = vmul.f32 %v2133_v21, %v2913_v31  ;;  %v516_v38 = vmul.f32 %v2135_v22, %v2968_v0 }
 0x152   : > { %v1120_v34 = vrot.slane %v958_v35, 1  ;;  %v1102_v39 = vadd.f32 %v1070_v17, %v786_v14  ;;  %v1136_v40 = vrot.slane %v959_v9, 1  ;;  %v787_v41 = vadd.f32 %v755_v33, %v719_v18 }
 0x153   : > { %v517_v42 = vmul.f32 %v2135_v22, %v2971_v32  ;;  %v548_v43 = vadd.f32 %v516_v38, %v480_v36  ;;  %v584_v44 = vmul.f32 %v2137_v23, %v442_v12  ;;  %v585_v45 = vmul.f32 %v2137_v23, %v443_v63 }
 0x154   : > { %v652_v46 = vmul.f32 %v2139_v24, %v2908_v16  ;;  %v1153_v21 = vsel %vm1138_vm3, %v1120_v34, %v1136_v40  ;;  %v1103_v47 = vadd.f32 %v1024_v62, %v787_v41  ;;  %v1169_v48 = vsel %vm1138_vm3, %v1136_v40, %v1120_v34 }
 0x155   : > { %v549_v49 = vadd.f32 %v517_v42, %v481_v37  ;;  %v1231_v50 = vadd.f32 %v1153_v21, %v1102_v39  ;;  %v1200_v22 = vmul.f32 %v2131_v20, %v1169_v48  ;;  %v616_v51 = vadd.f32 %v584_v44, %v548_v43 }
 0x156   : > { %v688_v52 = vmul.f32 %v2141_v25, %v2968_v0  ;;  %v756_v29 = vmul.f32 %v2143_v26, %v442_v12  ;;  %v824_v11 = vmul.f32 %v2145_v27, %v2908_v16  ;;  %v825_v8 = vmul.f32 %v2145_v27, %v2913_v31 }
 0x157   : > { %v617_v23 = vadd.f32 %v585_v45, %v549_v49  ;;  %v1270_v4 = vadd.f32 %v2822_v5, %v1231_v50  ;;  %v1232_v2 = vadd.f32 %v1200_v22, %v1103_v47  ;;  %v860_v30 = vmul.f32 %v2147_v28, %v2968_v0 }
 0x158   : > { %v720_v10 = vadd.f32 %v688_v52, %v652_v46  ;;  %v861_v14 = vmul.f32 %v2147_v28, %v2971_v32  ;;  %v928_v7 = vmul.f32 %v2762_v3, %v442_v12  ;;  %v929_v6 = vmul.f32 %v2762_v3, %v443_v63 }
 0x159   : > { %v992_v13 = vrot.slane %v616_v51, 7  ;;  %1303 = vst.msk [vmem:[%s2243_s12 + $0xe0] sm:$0xff] %vm1274_vm4, %v1270_v4  ;;  %v1271_v27 = vadd.f32 %v2822_v5, %v1232_v2  ;;  %v892_v15 = vadd.f32 %v860_v30, %v824_v11  ;;  %v1008_v53 = vrot.slane %v617_v23, 7 }
 0x15a   : > { %v788_v16 = vadd.f32 %v756_v29, %v720_v10  ;;  %v893_v54 = vadd.f32 %v861_v14, %v825_v8  ;;  %v653_v55 = vmul.f32 %v2139_v24, %v2913_v31  ;;  %v689_v0 = vmul.f32 %v2141_v25, %v2971_v32 }
 0x15b   : > { %v757_v28 = vmul.f32 %v2143_v26, %v443_v63  ;;  %1304 = vst.msk [vmem:[%s2243_s12 + $0xe8] sm:$0xff] %vm1274_vm4, %v1271_v27  ;;  %v960_v3 = vadd.f32 %v928_v7, %v892_v15  ;;  %v1041_v56 = vsel %vm1009_vm2, %v1008_v53, %v992_v13  ;;  %v1025_v24 = vsel %vm1009_vm2, %v992_v13, %v1008_v53 }
 0x15c   : > { %v961_v57 = vadd.f32 %v929_v6, %v893_v54  ;;  %v1072_v58 = vmul.f32 %v2128_v19, %v1041_v56  ;;  %v721_v59 = vadd.f32 %v689_v0, %v653_v55 }
 0x15d   : > { %v1121_v60 = vrot.slane %v960_v3, 1 }
 0x15e   : > { %v1104_v25 = vadd.f32 %v1072_v58, %v788_v16  ;;  %v1137_v26 = vrot.slane %v961_v57, 1  ;;  %v789_v31 = vadd.f32 %v757_v28, %v721_v59 }
 0x160   : > { %v1154_v32 = vsel %vm1138_vm3, %v1121_v60, %v1137_v26  ;;  %v1105_v33 = vadd.f32 %v1025_v24, %v789_v31  ;;  %v1170_v35 = vsel %vm1138_vm3, %v1137_v26, %v1121_v60 }
 0x161   : > { %v1233_v19 = vadd.f32 %v1154_v32, %v1104_v25  ;;  %v1202_v61 = vmul.f32 %v2131_v20, %v1170_v35 }
 0x163   : > { %v1272_v62 = vadd.f32 %v2822_v5, %v1233_v19  ;;  %v1234_v12 = vadd.f32 %v1202_v61, %v1105_v33 }
 0x165   : > { %1305 = vst.msk [vmem:[%s2243_s12 + $0xf0] sm:$0xff] %vm1274_vm4, %v1272_v62  ;;  %v1273_v1 = vadd.f32 %v2822_v5, %v1234_v12 }
 0x167   : > { %1306 = vst.msk [vmem:[%s2243_s12 + $0xf8] sm:$0xff] %vm1274_vm4, %v1273_v1 }
 0x168   : > { %1726 = shalt.err (!%p1723_p4)
}
 0x169   : > { %s1727_s28 = scalar_lea.hbm %s3080_s16, 4096  ;;  %s1731_s13 = scalar_lea.hbm %s3141_s5, 8192 }
 0x16a   : > { %p1728_p2 = scmp.ne.s32.totalorder %s3080_s16, %s1727_s28  ;;  %p1732_p8 = scmp.lt.u32.totalorder %s3080_s16, %s3141_s5 }
 0x16b   : > { %p1733_p12 = scmp.lt.u32.totalorder %s1731_s13, %s1727_s28  ;;  %p1735_p3 = scmp.lt.u32.totalorder %s1727_s28, %s3080_s16 }
 0x16c   : > { %p1729_p6 = pnand %p1728_p2, %p3188_p13 }
 0x16d   : > { %p1734_p1 = por %p1733_p12, %p1732_p8 }
 0x16e   : > { %p1730_p9 = pneg %p1729_p6 }
 0x16f   : > { %p1736_p11 = por %p1735_p3, %p1734_p1 }
 0x171   : > { %p1737_p0 = pnand %p1736_p11, %p1730_p9 }
 0x173   : > { %1740 = shalt.err (!%p1737_p0)
}
 0x174   : > { %s1813_s20 = smov 128   ;;  %s1814_s29 = smov 8  }
 0x175   : > { %1515 = dma.vmem_to_hbm [thread:$0]  (%p3188_p13), %s3082_s1, 4096, %s3080_s16, %s1308_s21, %s1813_s20, %s1813_s20, %s1814_s29  }
 0x176 PF: > { %s3189_s8 = sld [smem:[#allocation20_spill]]  ;;  %s3190_s10 = sld [smem:[#allocation17_spill]] }
 0x177   : > { %s1339_s12 = sand.u32 1, %s1783_s18  }
 0x178   : > { %s1340_s11 = scalar_lea.sflag [#allocation4], %s1339_s12 }
 0x17c   : > { %p3191_p5 = scmp.ne.s32.totalorder %s3189_s8, 0  ;;  %p3192_p10 = scmp.ge.s32.totalorder %s3190_s10, 2 }
 0x17e   : > { %p1532_p7 = pnand %p3192_p10, %p3191_p5 }
 0x180   : > { %1778 = dma.done.wait (!%p1532_p7), %s1340_s11, 4096  }
 0x181   : > { %1780 = vsyncadd (!%p1532_p7), %s1340_s11, 4294963200  ;;  %s25_s23 = sadd.s32 1, %s3190_s10   ;;  %s3193_s14 = sld [smem:[#allocation15_spill]] }
 0x182   : > { %p22_p4 = scmp.ge.s32.totalorder %s25_s23, 4   ;;  %s3194_s20 = sld [smem:[#allocation19_spill]] }
 0x183   : > { %s3195_s21 = sld [smem:[#allocation16_spill]]  ;;  %s3196_s22 = sld [smem:[#allocation18_spill]] }
 0x184   : > { %s3197_s18 = smov %s1787_s19  ;;  %24 = sbr.rel (!%p22_p4) target bundleno = 12 (0xc), region = 113 }
 0x187   : > { %s3198_s19 = smov %s3193_s14 }
 0x18b   :  { %1345 = vsyncpa [#allocation3], 1 }
 0x18c   :  { %1347 = vsyncpa [#allocation3 + $0x1], 1 }
 0x18d   :  { %1348 = vsyncpa [#allocation6], 1 }
 0x18e   :  { %1350 = vsyncpa [#allocation6 + $0x1], 1 }
 0x18f   :  { %1351 = vsyncpa [#allocation9], 1 }
 0x190   :  { %1352 = vsyncpa [#allocation4], 1 }
 0x191   :  { %1354 = vsyncpa [#allocation4 + $0x1], 1 }

</bundles_post_ra>
